<compile_context>
chip_gen: v5e
topology: v5e:2x2
jax: 0.10.0
libtpu: 0.0.40
codegen_flags: <defaults>
</compile_context>

<pallas_src>
import functools

import numpy as np

import jax
import jax.numpy as jnp
from jax.experimental import pallas as pl
from jax.experimental.pallas import tpu as pltpu

_VMEM_LIMIT = 32 * 1024 * 1024   # explicit scoped-VMEM budget; safe on v5e/v6e/v7x


def _round_up(x, m):
    return ((x + m - 1) // m) * m


# ---------------------------------------------------------------------------
# Kernel 1: fused 3x3 conv (stride 1, pad 1) + bias + ReLU + 2x2/2 max-pool
# ---------------------------------------------------------------------------
def _conv_relu_pool_kernel(x_ref, w_ref, b_ref, o_ref, *,
                           shifts, n_rows, H2, Wq, Cout):
    # x_ref: (1, Hp*Wq, 2*Cinp) bf16  -- padded image, one row per width-2 super-pixel
    # w_ref: (12*Cinp, 2*Cout) bf16   -- resident weight slab (even/odd output column)
    # b_ref: (1, 2*Cout) f32          -- resident bias (duplicated per parity)
    # o_ref: (1, H2, Wq, Cout) bf16   -- pooled output (cols >= W2 are unused garbage)
    lhs = jnp.concatenate([x_ref[0, s:s + n_rows, :] for s in shifts], axis=-1)
    acc = jnp.dot(lhs, w_ref[...], preferred_element_type=jnp.float32)
    acc = jnp.maximum(acc + b_ref[...], 0.0)                 # bias + ReLU (f32)
    h = jnp.maximum(acc[:, :Cout], acc[:, Cout:])            # horizontal 2-max (x pair)
    h = h[: 2 * H2 * Wq, :]                                  # drop trailing row if H odd
    h4 = h.reshape(H2, 2, Wq, Cout)
    o_ref[0] = jnp.maximum(h4[:, 0], h4[:, 1]).astype(o_ref.dtype)   # vertical 2-max


def conv3x3_relu_pool(x_nhwc, w12, b2row):
    """relu(conv3x3(x)+b) followed by MaxPool2d(2,2), fused in one kernel.

    x_nhwc: (B, H, W, Cin).  w12: (12*Cinp, 2*Cout) bf16 super-pixel slab.
    Returns (B, H//2, Wq, Cout) bf16 where Wq >= ceil((W+2)/2); only columns
    [0, W//2) are valid pooled outputs (the rest is never read downstream).
    """
    B, H, W, Cin = x_nhwc.shape
    K12, Cout2 = w12.shape
    Cout = Cout2 // 2
    Cinp = K12 // 12
    Wq = _round_up((W + 3) // 2, 8)          # super-pixel row width; 2*Wq >= W+2
    Hp = H + 3                               # 1 top pad + H + 2 bottom pads
    H2 = H // 2
    n_rows = H * Wq

    xp = jnp.pad(x_nhwc.astype(jnp.bfloat16),
                 ((0, 0), (1, 2), (1, 2 * Wq - W - 1), (0, Cinp - Cin)))
    x_flat = xp.reshape(B, Hp * Wq, 2 * Cinp)          # free view (row-major)
    shifts = tuple(dy * Wq + dq for dy in range(3) for dq in range(2))

    flops = 2 * B * n_rows * K12 * Cout2
    bytes_accessed = (x_flat.size * 2 + w12.size * 2 + b2row.size * 4
                      + B * H2 * Wq * Cout * 2)

    return pl.pallas_call(
        functools.partial(_conv_relu_pool_kernel, shifts=shifts,
                          n_rows=n_rows, H2=H2, Wq=Wq, Cout=Cout),
        grid=(B,),
        in_specs=[
            pl.BlockSpec((1, Hp * Wq, 2 * Cinp), lambda b: (b, 0, 0)),
            pl.BlockSpec((K12, Cout2), lambda b: (0, 0)),     # resident weights
            pl.BlockSpec((1, Cout2), lambda b: (0, 0)),       # resident bias
        ],
        out_specs=pl.BlockSpec((1, H2, Wq, Cout), lambda b: (b, 0, 0, 0)),
        out_shape=jax.ShapeDtypeStruct((B, H2, Wq, Cout), jnp.bfloat16),
        compiler_params=pltpu.CompilerParams(
            dimension_semantics=("parallel",),
            vmem_limit_bytes=_VMEM_LIMIT),
        cost_estimate=pl.CostEstimate(flops=flops, transcendentals=0,
                                      bytes_accessed=bytes_accessed),
    )(x_flat, w12, b2row)


# ---------------------------------------------------------------------------
# Kernel 2: fused MLP head  (relu(a @ w1 + b1) @ w2 + b2), K-streaming
# ---------------------------------------------------------------------------
def _mlp_head_kernel(a_ref, w1_ref, b1_ref, w2_ref, b2_ref, o_ref, acc_ref):
    k = pl.program_id(1)

    @pl.when(k == 0)
    def _():
        acc_ref[...] = jnp.zeros_like(acc_ref)

    acc_ref[...] += jnp.dot(a_ref[...], w1_ref[...],
                            preferred_element_type=jnp.float32)

    @pl.when(k == pl.num_programs(1) - 1)
    def _():
        h = jnp.maximum(acc_ref[...] + b1_ref[...], 0.0)
        # TODO(synk): training-mode dropout (p=0.5) omitted; eval-mode identity.
        logits = jnp.dot(h.astype(jnp.bfloat16), w2_ref[...],
                         preferred_element_type=jnp.float32) + b2_ref[...]
        o_ref[...] = logits.astype(o_ref.dtype)


def mlp_head(a, w1, b1, w2, b2, *, tk=4096):
    """relu(a @ w1 + b1) @ w2 + b2.  a:(M,K), w1:(K,N1), w2:(N1,N2).

    fc1 K is streamed in large tiles (f32 VMEM accumulator); fc2 is resident
    and applied in the last-K-step epilogue (no second kernel / HBM round trip).
    """
    M, K = a.shape
    K1, N1 = w1.shape
    N1w, N2 = w2.shape
    assert K == K1 and N1 == N1w
    tm = _round_up(M, 8)
    N1p = _round_up(N1, 128)
    N2p = _round_up(N2, 128)
    tk = min(tk, _round_up(K, 128))
    Mp, Kp = _round_up(M, tm), _round_up(K, tk)

    a_p = jnp.pad(a.astype(jnp.bfloat16), ((0, Mp - M), (0, Kp - K)))
    w1_p = jnp.pad(w1.astype(jnp.bfloat16), ((0, Kp - K), (0, N1p - N1)))
    b1_p = jnp.pad(b1.reshape(1, N1).astype(jnp.float32), ((0, 0), (0, N1p - N1)))
    w2_p = jnp.pad(w2.astype(jnp.bfloat16), ((0, N1p - N1), (0, N2p - N2)))
    b2_p = jnp.pad(b2.reshape(1, N2).astype(jnp.float32), ((0, 0), (0, N2p - N2)))

    flops = 2 * Mp * Kp * N1p + 2 * Mp * N1p * N2p
    bytes_accessed = a_p.size * 2 + w1_p.size * 2 + w2_p.size * 2 + Mp * N2p * 4

    out = pl.pallas_call(
        _mlp_head_kernel,
        grid=(Mp // tm, Kp // tk),
        in_specs=[
            pl.BlockSpec((tm, tk), lambda i, k: (i, k)),
            pl.BlockSpec((tk, N1p), lambda i, k: (k, 0)),
            pl.BlockSpec((1, N1p), lambda i, k: (0, 0)),
            pl.BlockSpec((N1p, N2p), lambda i, k: (0, 0)),    # resident fc2 weight
            pl.BlockSpec((1, N2p), lambda i, k: (0, 0)),
        ],
        out_specs=pl.BlockSpec((tm, N2p), lambda i, k: (i, 0)),
        out_shape=jax.ShapeDtypeStruct((Mp, N2p), jnp.float32),
        scratch_shapes=[pltpu.VMEM((tm, N1p), jnp.float32)],
        compiler_params=pltpu.CompilerParams(
            dimension_semantics=("parallel", "arbitrary"),
            vmem_limit_bytes=_VMEM_LIMIT),
        cost_estimate=pl.CostEstimate(flops=flops, transcendentals=0,
                                      bytes_accessed=bytes_accessed),
    )(a_p, w1_p, b1_p, w2_p, b2_p)
    return out[:M, :N2]


# ---------------------------------------------------------------------------
# Full forward pass (matches CNNModel.forward, dropout in eval mode)
# ---------------------------------------------------------------------------
def cnn_forward(x_nchw, p):
    B, _, H, W = x_nchw.shape
    x = jnp.transpose(x_nchw, (0, 2, 3, 1))                        # NCHW -> NHWC (once)

    y1 = conv3x3_relu_pool(x, p["conv1_w12"], p["conv1_b2"])       # (B, H/2, Wq1, 16) bf16
    H2, W2 = H // 2, W // 2
    y2 = conv3x3_relu_pool(y1[:, :, :W2, :], p["conv2_w12"], p["conv2_b2"])
    H4, W4 = H2 // 2, W2 // 2

    feat = y2[:, :, :W4, :].reshape(B, H4 * W4 * 32)               # NHWC flatten
    return mlp_head(feat, p["fc1_wT"], p["fc1_b"], p["fc2_wT"], p["fc2_b"])


# ---------------------------------------------------------------------------
# Parameters (PyTorch layouts) and one-time kernel-friendly transforms
# ---------------------------------------------------------------------------
def init_params(key, num_classes, image_size):
    H, W = image_size
    fc1_in = 32 * ((H // 2) // 2) * ((W // 2) // 2)
    ks = jax.random.split(key, 8)
    s = 0.1
    return {
        "conv1_w": jax.random.normal(ks[0], (16, 3, 3, 3), jnp.float32) * s,
        "conv1_b": jax.random.normal(ks[1], (16,), jnp.float32) * s,
        "conv2_w": jax.random.normal(ks[2], (32, 16, 3, 3), jnp.float32) * s,
        "conv2_b": jax.random.normal(ks[3], (32,), jnp.float32) * s,
        "fc1_w": jax.random.normal(ks[4], (128, fc1_in), jnp.float32) * s,   # (out, in)
        "fc1_b": jax.random.normal(ks[5], (128,), jnp.float32) * s,
        "fc2_w": jax.random.normal(ks[6], (num_classes, 128), jnp.float32) * s,
        "fc2_b": jax.random.normal(ks[7], (num_classes,), jnp.float32) * s,
    }


def _conv_pair_weights(w):
    """(Cout, Cin, 3, 3) OIHW -> (12*Cinp, 2*Cout) bf16 super-pixel slab.

    LHS feature index f = ((dy*2 + dq)*2 + j)*Cinp + cin refers to the padded
    pixel at row (y+dy), column (2q + 2dq + j); RHS column p*Cout + co is the
    conv output at x = 2q + p (p = 0 even / 1 odd column of the pooling pair).
    """
    w = np.asarray(w, np.float32)
    Cout, Cin, _, _ = w.shape
    Cinp = _round_up(Cin, 8)
    slab = np.zeros((3, 2, 2, Cinp, 2, Cout), np.float32)   # (dy, dq, j, cin, p, co)
    for dy in range(3):
        for dq in range(2):
            for j in range(2):
                for p in range(2):
                    kx = 2 * dq + j - p
                    if 0 <= kx <= 2:
                        slab[dy, dq, j, :Cin, p, :] = w[:, :, dy, kx].T
    return jnp.asarray(slab.reshape(12 * Cinp, 2 * Cout), jnp.bfloat16)


def _conv_pair_bias(b):
    b = np.asarray(b, np.float32).reshape(-1)
    return jnp.asarray(np.concatenate([b, b]).reshape(1, -1), jnp.float32)


def prepare_params(params, image_size):
    """One-time transforms: conv weights -> super-pixel slabs (bf16); fc1 weight
    columns permuted from NCHW-flatten to NHWC-flatten order; fc weights (K, N) bf16."""
    H, W = image_size
    H4, W4 = (H // 2) // 2, (W // 2) // 2
    C2 = params["conv2_w"].shape[0]

    # NHWC flat position (h, w, c) <- NCHW flat index c*H4*W4 + h*W4 + w
    q = np.transpose(np.arange(C2 * H4 * W4).reshape(C2, H4, W4), (1, 2, 0)).reshape(-1)
    fc1_w_nhwc = np.asarray(params["fc1_w"], np.float32)[:, q]

    return {
        "conv1_w12": _conv_pair_weights(params["conv1_w"]),
        "conv1_b2": _conv_pair_bias(params["conv1_b"]),
        "conv2_w12": _conv_pair_weights(params["conv2_w"]),
        "conv2_b2": _conv_pair_bias(params["conv2_b"]),
        "fc1_wT": jnp.asarray(fc1_w_nhwc.T, jnp.bfloat16),        # (K, 128)
        "fc1_b": params["fc1_b"].astype(jnp.float32),
        "fc2_wT": params["fc2_w"].T.astype(jnp.bfloat16),         # (128, num_classes)
        "fc2_b": params["fc2_b"].astype(jnp.float32),
    }


def cnn_reference(x_nchw, params):
    """Pure-JAX f32 reference with exact PyTorch semantics (eval mode)."""
    def conv(x, w, b):
        y = jax.lax.conv_general_dilated(
            x, w, window_strides=(1, 1), padding=((1, 1), (1, 1)),
            dimension_numbers=("NCHW", "OIHW", "NCHW"),
            precision=jax.lax.Precision.HIGHEST)
        return jax.nn.relu(y + b[None, :, None, None])

    def pool(x):
        return jax.lax.reduce_window(
            x, -jnp.inf, jax.lax.max,
            window_dimensions=(1, 1, 2, 2), window_strides=(1, 1, 2, 2),
            padding="VALID")

    x = pool(conv(x_nchw, params["conv1_w"], params["conv1_b"]))
    x = pool(conv(x, params["conv2_w"], params["conv2_b"]))
    x = x.reshape(x.shape[0], -1)                      # NCHW (PyTorch) flatten order
    x = jax.nn.relu(x @ params["fc1_w"].T + params["fc1_b"])
    return x @ params["fc2_w"].T + params["fc2_b"]


if __name__ == "__main__":
    # Small stand-in for the real (160, 90); W=10 exercises the odd-width
    # floor-division pooling path (10 -> 5 -> 2) just like 90 -> 45 -> 22.
    image_size = (16, 10)
    num_classes = 4
    batch = 2

    key = jax.random.PRNGKey(0)
    pkey, xkey = jax.random.split(key)
    params = init_params(pkey, num_classes, image_size)
    x = jax.random.normal(xkey, (batch, 3, image_size[0], image_size[1]), jnp.float32)

    kparams = prepare_params(params, image_size)
    out = jax.jit(cnn_forward)(x, kparams)
    out = jax.block_until_ready(out)

    assert out.shape == (batch, num_classes), out.shape
    assert bool(jnp.all(jnp.isfinite(out)))

    # numerical sanity check vs. f32 reference (kernel path uses bf16 MXU operands
    # and bf16-stored intermediate activations)
    ref = cnn_reference(x, params)
    err = float(jnp.max(jnp.abs(out - ref)))
    tol = 0.08 * float(jnp.max(jnp.abs(ref))) + 0.05
    assert err <= tol, (err, tol)

    print("KERNEL_OK")
</pallas_src>

<mosaic_0001>
module attributes {stable_mosaic.version = 11 : i64} {
  func.func @_conv_relu_pool_kernel(%arg0: i32, %arg1: memref<1x152x16xbf16, #tpu.memory_space<vmem>>, %arg2: memref<96x32xbf16, #tpu.memory_space<vmem>>, %arg3: memref<1x32xf32, #tpu.memory_space<vmem>>, %arg4: memref<1x8x8x16xbf16, #tpu.memory_space<vmem>>) attributes {dimension_semantics = [#tpu.dimension_semantics<parallel>], iteration_bounds = array<i64: 2>, scalar_prefetch = 0 : i64, scratch_operands = 0 : i64, tpu.core_type = #tpu.core_type<tc>, window_params = [{transform_indices = @transform_0, window_bounds = array<i64: 1, 152, 16>}, {pipeline_mode = #tpu.pipeline_mode<synchronous>, transform_indices = @transform_1, window_bounds = array<i64: 96, 32>}, {pipeline_mode = #tpu.pipeline_mode<synchronous>, transform_indices = @transform_2, window_bounds = array<i64: 1, 32>}, {transform_indices = @transform_3, window_bounds = array<i64: 1, 8, 8, 16>}]} {
    %c0 = arith.constant 0 : index
    %c0_0 = arith.constant 0 : index
    %c0_1 = arith.constant 0 : index
    %0 = vector.load %arg1[%c0, %c0_0, %c0_1] : memref<1x152x16xbf16, #tpu.memory_space<vmem>>, vector<1x128x16xbf16>
    %1 = vector.shape_cast %0 : vector<1x128x16xbf16> to vector<128x16xbf16>
    %c0_2 = arith.constant 0 : index
    %c1 = arith.constant 1 : index
    %c0_3 = arith.constant 0 : index
    %2 = vector.load %arg1[%c0_2, %c1, %c0_3] : memref<1x152x16xbf16, #tpu.memory_space<vmem>>, vector<1x128x16xbf16>
    %3 = vector.shape_cast %2 : vector<1x128x16xbf16> to vector<128x16xbf16>
    %c0_4 = arith.constant 0 : index
    %c8 = arith.constant 8 : index
    %c0_5 = arith.constant 0 : index
    %4 = vector.load %arg1[%c0_4, %c8, %c0_5] : memref<1x152x16xbf16, #tpu.memory_space<vmem>>, vector<1x128x16xbf16>
    %5 = vector.shape_cast %4 : vector<1x128x16xbf16> to vector<128x16xbf16>
    %c0_6 = arith.constant 0 : index
    %c9 = arith.constant 9 : index
    %c0_7 = arith.constant 0 : index
    %6 = vector.load %arg1[%c0_6, %c9, %c0_7] : memref<1x152x16xbf16, #tpu.memory_space<vmem>>, vector<1x128x16xbf16>
    %7 = vector.shape_cast %6 : vector<1x128x16xbf16> to vector<128x16xbf16>
    %c0_8 = arith.constant 0 : index
    %c16 = arith.constant 16 : index
    %c0_9 = arith.constant 0 : index
    %8 = vector.load %arg1[%c0_8, %c16, %c0_9] : memref<1x152x16xbf16, #tpu.memory_space<vmem>>, vector<1x128x16xbf16>
    %9 = vector.shape_cast %8 : vector<1x128x16xbf16> to vector<128x16xbf16>
    %c0_10 = arith.constant 0 : index
    %c17 = arith.constant 17 : index
    %c0_11 = arith.constant 0 : index
    %10 = vector.load %arg1[%c0_10, %c17, %c0_11] : memref<1x152x16xbf16, #tpu.memory_space<vmem>>, vector<1x128x16xbf16>
    %11 = vector.shape_cast %10 : vector<1x128x16xbf16> to vector<128x16xbf16>
    %12 = tpu.concatenate %1, %3, %5, %7, %9, %11 in 1 : vector<128x16xbf16>, vector<128x16xbf16>, vector<128x16xbf16>, vector<128x16xbf16>, vector<128x16xbf16>, vector<128x16xbf16> -> vector<128x96xbf16>
    %c0_12 = arith.constant 0 : index
    %c0_13 = arith.constant 0 : index
    %13 = vector.load %arg2[%c0_12, %c0_13] : memref<96x32xbf16, #tpu.memory_space<vmem>>, vector<96x32xbf16>
    %cst = arith.constant dense<0.000000e+00> : vector<128x32xf32>
    %14 = tpu.matmul %12, %13, %cst {dimension_numbers = #tpu.dot_dimension_numbers<[1], [0], [0], [1], [0, 0, 1, 1], [], []>} : vector<128x96xbf16>, vector<96x32xbf16>, vector<128x32xf32> -> vector<128x32xf32>
    %c0_14 = arith.constant 0 : index
    %c0_15 = arith.constant 0 : index
    %15 = vector.load %arg3[%c0_14, %c0_15] : memref<1x32xf32, #tpu.memory_space<vmem>>, vector<1x32xf32>
    %16 = vector.broadcast %15 : vector<1x32xf32> to vector<128x32xf32>
    %17 = arith.addf %14, %16 : vector<128x32xf32>
    %cst_16 = arith.constant 0.000000e+00 : f32
    %18 = vector.broadcast %cst_16 : f32 to vector<128x32xf32>
    %19 = arith.maximumf %17, %18 : vector<128x32xf32>
    %20 = vector.extract_strided_slice %19 {offsets = [0, 0], sizes = [128, 16], strides = [1, 1]} : vector<128x32xf32> to vector<128x16xf32>
    %21 = vector.extract_strided_slice %19 {offsets = [0, 16], sizes = [128, 16], strides = [1, 1]} : vector<128x32xf32> to vector<128x16xf32>
    %22 = arith.maximumf %20, %21 : vector<128x16xf32>
    %23 = vector.shape_cast %22 : vector<128x16xf32> to vector<8x2x8x16xf32>
    %24 = vector.extract_strided_slice %23 {offsets = [0, 0, 0, 0], sizes = [8, 1, 8, 16], strides = [1, 1, 1, 1]} : vector<8x2x8x16xf32> to vector<8x1x8x16xf32>
    %25 = vector.shape_cast %24 : vector<8x1x8x16xf32> to vector<8x8x16xf32>
    %26 = vector.extract_strided_slice %23 {offsets = [0, 1, 0, 0], sizes = [8, 1, 8, 16], strides = [1, 1, 1, 1]} : vector<8x2x8x16xf32> to vector<8x1x8x16xf32>
    %27 = vector.shape_cast %26 : vector<8x1x8x16xf32> to vector<8x8x16xf32>
    %28 = arith.maximumf %25, %27 : vector<8x8x16xf32>
    %29 = arith.truncf %28 : vector<8x8x16xf32> to vector<8x8x16xbf16>
    %c0_17 = arith.constant 0 : index
    %c0_18 = arith.constant 0 : index
    %c0_19 = arith.constant 0 : index
    %c0_20 = arith.constant 0 : index
    %30 = vector.load %arg4[%c0_17, %c0_18, %c0_19, %c0_20] : memref<1x8x8x16xbf16, #tpu.memory_space<vmem>>, vector<1x8x8x16xbf16>
    %31 = vector.shape_cast %30 : vector<1x8x8x16xbf16> to vector<8x8x16xbf16>
    %32 = vector.shape_cast %29 : vector<8x8x16xbf16> to vector<1x8x8x16xbf16>
    tpu.vector_store %arg4[%c0_17, %c0_18, %c0_19, %c0_20], %32 {strides = array<i32>} : memref<1x8x8x16xbf16, #tpu.memory_space<vmem>>, vector<1x8x8x16xbf16>,
    return
  }
  func.func @transform_0(%arg0: i32) -> (i32, i32, i32) {
    %c0_i32 = arith.constant 0 : i32
    %c0_i32_0 = arith.constant 0 : i32
    %c0_i32_1 = arith.constant 0 : i32
    return %arg0, %c0_i32, %c0_i32_0 : i32, i32, i32
  }
  func.func @transform_1(%arg0: i32) -> (i32, i32) {
    %c0_i32 = arith.constant 0 : i32
    %c0_i32_0 = arith.constant 0 : i32
    %c0_i32_1 = arith.constant 0 : i32
    return %c0_i32, %c0_i32_0 : i32, i32
  }
  func.func @transform_2(%arg0: i32) -> (i32, i32) {
    %c0_i32 = arith.constant 0 : i32
    %c0_i32_0 = arith.constant 0 : i32
    %c0_i32_1 = arith.constant 0 : i32
    return %c0_i32, %c0_i32_0 : i32, i32
  }
  func.func @transform_3(%arg0: i32) -> (i32, i32, i32, i32) {
    %c0_i32 = arith.constant 0 : i32
    %c0_i32_0 = arith.constant 0 : i32
    %c0_i32_1 = arith.constant 0 : i32
    %c0_i32_2 = arith.constant 0 : i32
    return %arg0, %c0_i32, %c0_i32_0, %c0_i32_1 : i32, i32, i32, i32
  }
}

module attributes {stable_mosaic.version = 11 : i64} {
  func.func @_conv_relu_pool_kernel(%arg0: i32, %arg1: memref<1x88x32xbf16, #tpu.memory_space<vmem>>, %arg2: memref<192x64xbf16, #tpu.memory_space<vmem>>, %arg3: memref<1x64xf32, #tpu.memory_space<vmem>>, %arg4: memref<1x4x8x32xbf16, #tpu.memory_space<vmem>>) attributes {dimension_semantics = [#tpu.dimension_semantics<parallel>], iteration_bounds = array<i64: 2>, scalar_prefetch = 0 : i64, scratch_operands = 0 : i64, tpu.core_type = #tpu.core_type<tc>, window_params = [{transform_indices = @transform_0, window_bounds = array<i64: 1, 88, 32>}, {pipeline_mode = #tpu.pipeline_mode<synchronous>, transform_indices = @transform_1, window_bounds = array<i64: 192, 64>}, {pipeline_mode = #tpu.pipeline_mode<synchronous>, transform_indices = @transform_2, window_bounds = array<i64: 1, 64>}, {transform_indices = @transform_3, window_bounds = array<i64: 1, 4, 8, 32>}]} {
    %c0 = arith.constant 0 : index
    %c0_0 = arith.constant 0 : index
    %c0_1 = arith.constant 0 : index
    %0 = vector.load %arg1[%c0, %c0_0, %c0_1] : memref<1x88x32xbf16, #tpu.memory_space<vmem>>, vector<1x64x32xbf16>
    %1 = vector.shape_cast %0 : vector<1x64x32xbf16> to vector<64x32xbf16>
    %c0_2 = arith.constant 0 : index
    %c1 = arith.constant 1 : index
    %c0_3 = arith.constant 0 : index
    %2 = vector.load %arg1[%c0_2, %c1, %c0_3] : memref<1x88x32xbf16, #tpu.memory_space<vmem>>, vector<1x64x32xbf16>
    %3 = vector.shape_cast %2 : vector<1x64x32xbf16> to vector<64x32xbf16>
    %c0_4 = arith.constant 0 : index
    %c8 = arith.constant 8 : index
    %c0_5 = arith.constant 0 : index
    %4 = vector.load %arg1[%c0_4, %c8, %c0_5] : memref<1x88x32xbf16, #tpu.memory_space<vmem>>, vector<1x64x32xbf16>
    %5 = vector.shape_cast %4 : vector<1x64x32xbf16> to vector<64x32xbf16>
    %c0_6 = arith.constant 0 : index
    %c9 = arith.constant 9 : index
    %c0_7 = arith.constant 0 : index
    %6 = vector.load %arg1[%c0_6, %c9, %c0_7] : memref<1x88x32xbf16, #tpu.memory_space<vmem>>, vector<1x64x32xbf16>
    %7 = vector.shape_cast %6 : vector<1x64x32xbf16> to vector<64x32xbf16>
    %c0_8 = arith.constant 0 : index
    %c16 = arith.constant 16 : index
    %c0_9 = arith.constant 0 : index
    %8 = vector.load %arg1[%c0_8, %c16, %c0_9] : memref<1x88x32xbf16, #tpu.memory_space<vmem>>, vector<1x64x32xbf16>
    %9 = vector.shape_cast %8 : vector<1x64x32xbf16> to vector<64x32xbf16>
    %c0_10 = arith.constant 0 : index
    %c17 = arith.constant 17 : index
    %c0_11 = arith.constant 0 : index
    %10 = vector.load %arg1[%c0_10, %c17, %c0_11] : memref<1x88x32xbf16, #tpu.memory_space<vmem>>, vector<1x64x32xbf16>
    %11 = vector.shape_cast %10 : vector<1x64x32xbf16> to vector<64x32xbf16>
    %12 = tpu.concatenate %1, %3, %5, %7, %9, %11 in 1 : vector<64x32xbf16>, vector<64x32xbf16>, vector<64x32xbf16>, vector<64x32xbf16>, vector<64x32xbf16>, vector<64x32xbf16> -> vector<64x192xbf16>
    %c0_12 = arith.constant 0 : index
    %c0_13 = arith.constant 0 : index
    %13 = vector.load %arg2[%c0_12, %c0_13] : memref<192x64xbf16, #tpu.memory_space<vmem>>, vector<192x64xbf16>
    %cst = arith.constant dense<0.000000e+00> : vector<64x64xf32>
    %14 = tpu.matmul %12, %13, %cst {dimension_numbers = #tpu.dot_dimension_numbers<[1], [0], [0], [1], [0, 0, 1, 1], [], []>} : vector<64x192xbf16>, vector<192x64xbf16>, vector<64x64xf32> -> vector<64x64xf32>
    %c0_14 = arith.constant 0 : index
    %c0_15 = arith.constant 0 : index
    %15 = vector.load %arg3[%c0_14, %c0_15] : memref<1x64xf32, #tpu.memory_space<vmem>>, vector<1x64xf32>
    %16 = vector.broadcast %15 : vector<1x64xf32> to vector<64x64xf32>
    %17 = arith.addf %14, %16 : vector<64x64xf32>
    %cst_16 = arith.constant 0.000000e+00 : f32
    %18 = vector.broadcast %cst_16 : f32 to vector<64x64xf32>
    %19 = arith.maximumf %17, %18 : vector<64x64xf32>
    %20 = vector.extract_strided_slice %19 {offsets = [0, 0], sizes = [64, 32], strides = [1, 1]} : vector<64x64xf32> to vector<64x32xf32>
    %21 = vector.extract_strided_slice %19 {offsets = [0, 32], sizes = [64, 32], strides = [1, 1]} : vector<64x64xf32> to vector<64x32xf32>
    %22 = arith.maximumf %20, %21 : vector<64x32xf32>
    %23 = vector.shape_cast %22 : vector<64x32xf32> to vector<4x2x8x32xf32>
    %24 = vector.extract_strided_slice %23 {offsets = [0, 0, 0, 0], sizes = [4, 1, 8, 32], strides = [1, 1, 1, 1]} : vector<4x2x8x32xf32> to vector<4x1x8x32xf32>
    %25 = vector.shape_cast %24 : vector<4x1x8x32xf32> to vector<4x8x32xf32>
    %26 = vector.extract_strided_slice %23 {offsets = [0, 1, 0, 0], sizes = [4, 1, 8, 32], strides = [1, 1, 1, 1]} : vector<4x2x8x32xf32> to vector<4x1x8x32xf32>
    %27 = vector.shape_cast %26 : vector<4x1x8x32xf32> to vector<4x8x32xf32>
    %28 = arith.maximumf %25, %27 : vector<4x8x32xf32>
    %29 = arith.truncf %28 : vector<4x8x32xf32> to vector<4x8x32xbf16>
    %c0_17 = arith.constant 0 : index
    %c0_18 = arith.constant 0 : index
    %c0_19 = arith.constant 0 : index
    %c0_20 = arith.constant 0 : index
    %30 = vector.load %arg4[%c0_17, %c0_18, %c0_19, %c0_20] : memref<1x4x8x32xbf16, #tpu.memory_space<vmem>>, vector<1x4x8x32xbf16>
    %31 = vector.shape_cast %30 : vector<1x4x8x32xbf16> to vector<4x8x32xbf16>
    %32 = vector.shape_cast %29 : vector<4x8x32xbf16> to vector<1x4x8x32xbf16>
    tpu.vector_store %arg4[%c0_17, %c0_18, %c0_19, %c0_20], %32 {strides = array<i32>} : memref<1x4x8x32xbf16, #tpu.memory_space<vmem>>, vector<1x4x8x32xbf16>,
    return
  }
  func.func @transform_0(%arg0: i32) -> (i32, i32, i32) {
    %c0_i32 = arith.constant 0 : i32
    %c0_i32_0 = arith.constant 0 : i32
    %c0_i32_1 = arith.constant 0 : i32
    return %arg0, %c0_i32, %c0_i32_0 : i32, i32, i32
  }
  func.func @transform_1(%arg0: i32) -> (i32, i32) {
    %c0_i32 = arith.constant 0 : i32
    %c0_i32_0 = arith.constant 0 : i32
    %c0_i32_1 = arith.constant 0 : i32
    return %c0_i32, %c0_i32_0 : i32, i32
  }
  func.func @transform_2(%arg0: i32) -> (i32, i32) {
    %c0_i32 = arith.constant 0 : i32
    %c0_i32_0 = arith.constant 0 : i32
    %c0_i32_1 = arith.constant 0 : i32
    return %c0_i32, %c0_i32_0 : i32, i32
  }
  func.func @transform_3(%arg0: i32) -> (i32, i32, i32, i32) {
    %c0_i32 = arith.constant 0 : i32
    %c0_i32_0 = arith.constant 0 : i32
    %c0_i32_1 = arith.constant 0 : i32
    %c0_i32_2 = arith.constant 0 : i32
    return %arg0, %c0_i32, %c0_i32_0, %c0_i32_1 : i32, i32, i32, i32
  }
}

module attributes {stable_mosaic.version = 11 : i64} {
  func.func @_mlp_head_kernel(%arg0: i32, %arg1: i32, %arg2: memref<8x256xbf16, #tpu.memory_space<vmem>>, %arg3: memref<256x128xbf16, #tpu.memory_space<vmem>>, %arg4: memref<1x128xf32, #tpu.memory_space<vmem>>, %arg5: memref<128x128xbf16, #tpu.memory_space<vmem>>, %arg6: memref<1x128xf32, #tpu.memory_space<vmem>>, %arg7: memref<8x128xf32, #tpu.memory_space<vmem>>, %arg8: memref<8x128xf32, #tpu.memory_space<vmem>>) attributes {dimension_semantics = [#tpu.dimension_semantics<parallel>, #tpu.dimension_semantics<arbitrary>], iteration_bounds = array<i64: 1, 1>, scalar_prefetch = 0 : i64, scratch_operands = 1 : i64, tpu.core_type = #tpu.core_type<tc>, window_params = [{transform_indices = @transform_0, window_bounds = array<i64: 8, 256>}, {transform_indices = @transform_1, window_bounds = array<i64: 256, 128>}, {pipeline_mode = #tpu.pipeline_mode<synchronous>, transform_indices = @transform_2, window_bounds = array<i64: 1, 128>}, {pipeline_mode = #tpu.pipeline_mode<synchronous>, transform_indices = @transform_3, window_bounds = array<i64: 128, 128>}, {pipeline_mode = #tpu.pipeline_mode<synchronous>, transform_indices = @transform_4, window_bounds = array<i64: 1, 128>}, {transform_indices = @transform_5, window_bounds = array<i64: 8, 128>}]} {
    %c0_i32 = arith.constant 0 : i32
    %0 = arith.cmpi eq, %arg1, %c0_i32 : i32
    %1 = arith.extui %0 : i1 to i32
    %c0_i32_0 = arith.constant 0 : i32
    %2 = arith.cmpi ne, %1, %c0_i32_0 : i32
    scf.if %2 {
      %cst_10 = arith.constant 0.000000e+00 : f32
      %12 = vector.broadcast %cst_10 : f32 to vector<8x128xf32>
      %c0_11 = arith.constant 0 : index
      %c0_12 = arith.constant 0 : index
      %13 = vector.load %arg8[%c0_11, %c0_12] : memref<8x128xf32, #tpu.memory_space<vmem>>, vector<8x128xf32>
      tpu.vector_store %arg8[%c0_11, %c0_12], %12 {strides = array<i32>} : memref<8x128xf32, #tpu.memory_space<vmem>>, vector<8x128xf32>,
    } else {
    }
    %c0 = arith.constant 0 : index
    %c0_1 = arith.constant 0 : index
    %3 = vector.load %arg8[%c0, %c0_1] : memref<8x128xf32, #tpu.memory_space<vmem>>, vector<8x128xf32>
    %c0_2 = arith.constant 0 : index
    %c0_3 = arith.constant 0 : index
    %4 = vector.load %arg2[%c0_2, %c0_3] : memref<8x256xbf16, #tpu.memory_space<vmem>>, vector<8x256xbf16>
    %c0_4 = arith.constant 0 : index
    %c0_5 = arith.constant 0 : index
    %5 = vector.load %arg3[%c0_4, %c0_5] : memref<256x128xbf16, #tpu.memory_space<vmem>>, vector<256x128xbf16>
    %cst = arith.constant dense<0.000000e+00> : vector<8x128xf32>
    %6 = tpu.matmul %4, %5, %cst {dimension_numbers = #tpu.dot_dimension_numbers<[1], [0], [0], [1], [0, 0, 1, 1], [], []>} : vector<8x256xbf16>, vector<256x128xbf16>, vector<8x128xf32> -> vector<8x128xf32>
    %7 = arith.addf %3, %6 : vector<8x128xf32>
    %c0_6 = arith.constant 0 : index
    %c0_7 = arith.constant 0 : index
    %8 = vector.load %arg8[%c0_6, %c0_7] : memref<8x128xf32, #tpu.memory_space<vmem>>, vector<8x128xf32>
    tpu.vector_store %arg8[%c0_6, %c0_7], %7 {strides = array<i32>} : memref<8x128xf32, #tpu.memory_space<vmem>>, vector<8x128xf32>,
    %c0_i32_8 = arith.constant 0 : i32
    %9 = arith.cmpi eq, %arg1, %c0_i32_8 : i32
    %10 = arith.extui %9 : i1 to i32
    %c0_i32_9 = arith.constant 0 : i32
    %11 = arith.cmpi ne, %10, %c0_i32_9 : i32
    scf.if %11 {
      %c0_10 = arith.constant 0 : index
      %c0_11 = arith.constant 0 : index
      %12 = vector.load %arg8[%c0_10, %c0_11] : memref<8x128xf32, #tpu.memory_space<vmem>>, vector<8x128xf32>
      %c0_12 = arith.constant 0 : index
      %c0_13 = arith.constant 0 : index
      %13 = vector.load %arg4[%c0_12, %c0_13] : memref<1x128xf32, #tpu.memory_space<vmem>>, vector<1x128xf32>
      %14 = vector.broadcast %13 : vector<1x128xf32> to vector<8x128xf32>
      %15 = arith.addf %12, %14 : vector<8x128xf32>
      %cst_14 = arith.constant 0.000000e+00 : f32
      %16 = vector.broadcast %cst_14 : f32 to vector<8x128xf32>
      %17 = arith.maximumf %15, %16 : vector<8x128xf32>
      %18 = arith.truncf %17 : vector<8x128xf32> to vector<8x128xbf16>
      %c0_15 = arith.constant 0 : index
      %c0_16 = arith.constant 0 : index
      %19 = vector.load %arg5[%c0_15, %c0_16] : memref<128x128xbf16, #tpu.memory_space<vmem>>, vector<128x128xbf16>
      %cst_17 = arith.constant dense<0.000000e+00> : vector<8x128xf32>
      %20 = tpu.matmul %18, %19, %cst_17 {dimension_numbers = #tpu.dot_dimension_numbers<[1], [0], [0], [1], [0, 0, 1, 1], [], []>} : vector<8x128xbf16>, vector<128x128xbf16>, vector<8x128xf32> -> vector<8x128xf32>
      %c0_18 = arith.constant 0 : index
      %c0_19 = arith.constant 0 : index
      %21 = vector.load %arg6[%c0_18, %c0_19] : memref<1x128xf32, #tpu.memory_space<vmem>>, vector<1x128xf32>
      %22 = vector.broadcast %21 : vector<1x128xf32> to vector<8x128xf32>
      %23 = arith.addf %20, %22 : vector<8x128xf32>
      %c0_20 = arith.constant 0 : index
      %c0_21 = arith.constant 0 : index
      %24 = vector.load %arg7[%c0_20, %c0_21] : memref<8x128xf32, #tpu.memory_space<vmem>>, vector<8x128xf32>
      tpu.vector_store %arg7[%c0_20, %c0_21], %23 {strides = array<i32>} : memref<8x128xf32, #tpu.memory_space<vmem>>, vector<8x128xf32>,
    } else {
    }
    return
  }
  func.func @transform_0(%arg0: i32, %arg1: i32) -> (i32, i32) {
    %c0_i32 = arith.constant 0 : i32
    return %arg0, %arg1 : i32, i32
  }
  func.func @transform_1(%arg0: i32, %arg1: i32) -> (i32, i32) {
    %c0_i32 = arith.constant 0 : i32
    %c0_i32_0 = arith.constant 0 : i32
    return %arg1, %c0_i32 : i32, i32
  }
  func.func @transform_2(%arg0: i32, %arg1: i32) -> (i32, i32) {
    %c0_i32 = arith.constant 0 : i32
    %c0_i32_0 = arith.constant 0 : i32
    %c0_i32_1 = arith.constant 0 : i32
    return %c0_i32, %c0_i32_0 : i32, i32
  }
  func.func @transform_3(%arg0: i32, %arg1: i32) -> (i32, i32) {
    %c0_i32 = arith.constant 0 : i32
    %c0_i32_0 = arith.constant 0 : i32
    %c0_i32_1 = arith.constant 0 : i32
    return %c0_i32, %c0_i32_0 : i32, i32
  }
  func.func @transform_4(%arg0: i32, %arg1: i32) -> (i32, i32) {
    %c0_i32 = arith.constant 0 : i32
    %c0_i32_0 = arith.constant 0 : i32
    %c0_i32_1 = arith.constant 0 : i32
    return %c0_i32, %c0_i32_0 : i32, i32
  }
  func.func @transform_5(%arg0: i32, %arg1: i32) -> (i32, i32) {
    %c0_i32 = arith.constant 0 : i32
    %c0_i32_0 = arith.constant 0 : i32
    return %arg0, %c0_i32 : i32, i32
  }
}

</mosaic_0001>

<bundles_post_ra>
// kernel: cnn_forward.3
= control target key start
LH: loop header
LB: loop body
LE: loop exit
PB: predicated region body
PF: predicated region fallthrough
CT: control target
= control target key end

     0   :  { %s1121_s12 = smov 0   ;;  %s1526_s0 = inlined_call_operand.vmem [shape: bf16[2,152,16], index: 0, kind: input, shape index: {}]   ;;  %s1527_s1 = inlined_call_operand.vmem [shape: bf16[96,32], index: 1, kind: input, shape index: {}]   ;;  %s1528_s2 = inlined_call_operand.vmem [shape: f32[1,32], index: 2, kind: input, shape index: {}]   ;;  %s1529_s3 = inlined_call_operand.vmem [shape: bf16[2,8,8,16], index: 3, kind: output, shape index: {}]  }
   0x1 LB: > { %s864_s13 = sadd.s32 4294967295, %s1093_s12   ;;  %p868_p0 = scmp.ge.s32.totalorder %s1093_s12, 1  ;;  %s1093_s12 = sphi %s1121_s12, %s13_s12  }
   0x2   : > { %p137_p1 = scmp.lt.s32.totalorder %s1093_s12, 3 }
   0x4   : > { %p138_p2 = pnand %p868_p0, %p137_p1 }
   0x5   : > { %p161_p3 = scmp.lt.s32.totalorder (!%p138_p2), %s864_s13, 1  ;;  %s1095_s18 = smov (!%p138_p2), 32  }
   0x6   : > { %141 = sbr.rel (%p138_p2) target bundleno = 516 (0x204), region = 32  ;;  %s1096_s19 = smov (!%p138_p2), 16  }
   0x7   : > { %s1097_s20 = smov (!%p138_p2), 80   ;;  %s1098_s21 = smov (!%p138_p2), 48  }
   0x8   : > { %s1099_s22 = smov (!%p138_p2), 64   ;;  %s1100_s10 = smov (!%p138_p2), 112  }
   0xb   : > { %s1531_s13 = smov (!%p161_p3, %s864_s13), 1  ;;  %vm236_vm0 = vsmask.f32 7424  ;;  %vm485_vm1 = vcmask 130048   ;;  %vm502_vm2 = vcmask 261120   ;;  %vm519_vm3 = vcmask 392192  }
   0xc   : > { %s1031_s14 = smul.u32 76, %s1531_s13  ;;  %vm553_vm4 = vcmask 654336   ;;  %vm536_vm5 = vcmask 523264   ;;  %vm622_vm6 = vcmask 785408   ;;  %s906_s11 = sshll.u32 %s1531_s13, 5  ;;  %vm800_vm7 = vcmask 125952  }
   0xd   : > { %s1485_s16 = scalar_lea.vmem %s1529_s3, %s906_s11 }
   0xe   : > { %s1135_s17 = scalar_lea.vmem %s1526_s0, %s1031_s14 }
   0xf   : > { %v1002_v0 = vld [vmem:[%s1135_s17 + $0x24] sm:$0xff]   ;;  %v1148_v6 = vld [vmem:[%s1135_s17 + $0x30] sm:$0xff]   ;;  %v1151_v7 = vld [vmem:[%s1135_s17 + $0x38] sm:$0xff]  }
  0x10   : > { %v1139_v1 = vld [vmem:[%s1135_s17 + $0x20] sm:$0xff]   ;;  %v1142_v2 = vld [vmem:[%s1135_s17 + $0x28] sm:$0xff]   ;;  %339 = vrot.lane.b32.xlu1 %v1002_v0, %s1095_s18  ;;  %v382_v8 = vshll.u32 %v1002_v0, 16  ;;  %v285_v9 = vshll.u32 %v1148_v6, 16  ;;  %v289_v14 = vshrl.u32 %v1148_v6, 16  ;;  %v293_v15 = vshll.u32 %v1151_v7, 16 }
  0x11   : > { %v269_v3 = vshll.u32 %v1139_v1, 16  ;;  %v273_v4 = vshrl.u32 %v1139_v1, 16  ;;  %v277_v5 = vshll.u32 %v1142_v2, 16  ;;  %v281_v12 = vshrl.u32 %v1142_v2, 16  ;;  %v1162_v18 = vld [vmem:[%s1135_s17 + $0x2c] sm:$0xff]   ;;  %v1005_v19 = vld [vmem:[%s1135_s17 + $0x34] sm:$0xff]  }
  0x12   : > { %v287_v13 = vrot.slane %v285_v9, 1  ;;  %v1165_v20 = vrot.slane %v382_v8, 1  ;;  %v295_v24 = vrot.slane %v293_v15, 1  ;;  %v1178_v25 = vld [vmem:[%s1135_s17] sm:$0xff]   ;;  %v386_v26 = vshrl.u32 %v1002_v0, 16  ;;  %v1193_v34 = vld [vmem:[%s1135_s17 + $0x8] sm:$0xff]  }
  0x13   : > { %v1155_v10 = vrot.slane %v269_v3, 1  ;;  %v279_v11 = vrot.slane %v277_v5, 1  ;;  %v398_v27 = vshll.u32 %v1005_v19, 16  ;;  %v390_v28 = vshll.u32 %v1162_v18, 16  ;;  %v1182_v29 = vld [vmem:[%s1135_s17 + $0x3c] sm:$0xff]   ;;  %v1212_v45 = vld [vmem:[%s1135_s17 + $0x10] sm:$0xff]  }
  0x14   : > { %v291_v23 = vor.u32 %v289_v14, %v287_v13  ;;  %v388_v30 = vor.u32 %v386_v26, %v1165_v20  ;;  %v240_v31 = vshll.u32 %v1178_v25, 16  ;;  %v402_v37 = vshrl.u32 %v1005_v19, 16  ;;  %v1206_v42 = vld [vmem:[%s1135_s17 + $0x40] sm:$0xff]   ;;  %v1220_v51 = vld [vmem:[%s1135_s17 + $0x18] sm:$0xff]   ;;  %v1235_v62 = vld [vmem:[%s1135_s17 + $0xc] sm:$0xff]  }
  0x15   : > { %v275_v16 = vor.u32 %v273_v4, %v1155_v10  ;;  %v283_v17 = vor.u32 %v281_v12, %v279_v11  ;;  %v1187_v32 = vrot.slane %v390_v28, 1  ;;  %v1197_v36 = vrot.slane %v398_v27, 1  ;;  %v994_v56 = vld [vmem:[%s1135_s17 + $0x4] sm:$0xff]   ;;  %v998_v9 = vld [vmem:[%s1135_s17 + $0x14] sm:$0xff]   ;;  %v1248_v12 = vld [vmem:[%s1135_s17 + $0x1c] sm:$0xff]  }
  0x16   : > { %v1190_v33 = vsel %vm236_vm0, %v291_v23, %v295_v24  ;;  %v406_v38 = vshll.u32 %v1182_v29, 16  ;;  %v238_v39 = vshrl.u32 %v1178_v25, 16  ;;  %v242_v40 = vrot.slane %v240_v31, 1  ;;  %v188_v27 = vld [vmem:[%s1135_s17 + $0x40] sm:$0x1] }
  0x17   : > { %v1168_v21 = vsel %vm236_vm0, %v275_v16, %v279_v11  ;;  %v1171_v22 = vsel %vm236_vm0, %v283_v17, %v287_v13  ;;  %v393_v35 = vsel %vm236_vm0, %v388_v30, %v1187_v32  ;;  %v245_v41 = vshll.u32 %v1193_v34, 16  ;;  %v190_v30 = vld [vmem:[%s1135_s17 + $0x44] sm:$0x1] }
  0x18   : > { %313 = vrot.lane.b32.xlu0 %v1168_v21, %s1096_s19  ;;  %477 = vrot.lane.b32.xlu2 %v1171_v22, %s1097_s20  ;;  %v404_v43 = vor.u32 %v402_v37, %v1197_v36  ;;  %v1209_v44 = vrot.slane %v406_v38, 1  ;;  %v253_v46 = vshll.u32 %v1212_v45, 16  ;;  %v243_v47 = vor.u32 %v242_v40, %v238_v39 }
  0x19   : > { %343 = vrot.lane.b32.xlu1 %v1005_v19, %s1095_s18  ;;  %v247_v48 = vrot.slane %v245_v41, 1  ;;  %v297_v49 = vshrl.u32 %v1151_v7, 16  ;;  %v457_v50 = vshll.u32 %v1206_v42, 16  ;;  %v257_v54 = vshrl.u32 %v1212_v45, 16 }
  0x1a   : > { %v409_v52 = vsel %vm236_vm0, %v404_v43, %v1209_v44  ;;  %v255_v53 = vrot.slane %v253_v46, 1  ;;  %v261_v57 = vshll.u32 %v1220_v51, 16  ;;  %v353_v60 = vshll.u32 %v994_v56, 16 }
  0x1b   : > { %v248_v55 = vsel %vm236_vm0, %v243_v47, %v247_v48  ;;  %v299_v58 = vor.u32 %v297_v49, %v295_v24  ;;  %v1230_v59 = vrot.slane %v457_v50, 1  ;;  %v351_v4 = vshrl.u32 %v994_v56, 16 }
  0x1c   : > { %v259_v61 = vor.u32 %v257_v54, %v255_v53  ;;  %v263_v63 = vrot.slane %v261_v57, 1  ;;  %v355_v5 = vrot.slane %v353_v60, 1  ;;  %v358_v8 = vshll.u32 %v1235_v62, 16 }
  0x1d   : > { %v460_v0 = vsel %vm236_vm0, %v299_v58, %v1230_v59  ;;  %v366_v11 = vshll.u32 %v998_v9, 16  ;;  %v370_v16 = vshrl.u32 %v998_v9, 16  ;;  %v374_v17 = vshll.u32 %v1248_v12, 16 }
  0x1e   : > { %v1240_v3 = vsel %vm236_vm0, %v259_v61, %v263_v63  ;;  %v356_v13 = vor.u32 %v355_v5, %v351_v4  ;;  %v360_v14 = vrot.slane %v358_v8, 1  ;;  %v265_v23 = vshrl.u32 %v1220_v51, 16  ;;  %v910_v5 = vld [vmem:[%s1527_s1 + $0x18] sm:$0xff] }
  0x1f   : > { %v1251_v15 = vrot.slane %v366_v11, 1  ;;  %v376_v26 = vrot.slane %v374_v17, 1  ;;  %v234_v37 = vunpack.c.l.b16 %v188_v27  ;;  %v348_v39 = vunpack.c.l.b16 %v190_v30  ;;  %v907_v11 = vld [vmem:[%s1527_s1] sm:$0xff] }
  0x20   : > { %317 = vrot.lane.b32.xlu0 %v1190_v33, %s1096_s19  ;;  %426 = vrot.lane.b32.xlu2 %v393_v35, %s1098_s21  ;;  %v361_v19 = vsel %vm236_vm0, %v356_v13, %v360_v14  ;;  %v267_v28 = vor.u32 %v265_v23, %v263_v63  ;;  %v249_v35 = vshrl.u32 %v1193_v34, 16  ;;  %v410_v49 = vshrl.u32 %v1182_v29, 16 }
  0x21   : > { %449 = vrot.lane.b32.xlu1 %v1151_v7, %s1099_s22  ;;  %v372_v24 = vor.u32 %v370_v16, %v1251_v15  ;;  %v235_v41 = vpack.c.b16 %v234_v37, %v234_v37  ;;  %v349_v43 = vpack.c.b16 %v348_v39, %v348_v39  ;;  %v362_v63 = vshrl.u32 %v1235_v62, 16 }
  0x22   : > { %v272_v38 = vsel %vm236_vm0, %v267_v28, %v1155_v10  ;;  %v251_v40 = vor.u32 %v249_v35, %v247_v48  ;;  %v412_v48 = vor.u32 %v410_v49, %v1209_v44 }
  0x23   : > { %v377_v31 = vsel %vm236_vm0, %v372_v24, %v376_v26  ;;  %v301_v47 = vshll.u32 %v235_v41, 16  ;;  %v414_v50 = vshll.u32 %v349_v43, 16 }
  0x24   : > { %v256_v46 = vsel %vm236_vm0, %v251_v40, %v255_v53  ;;  %v394_v53 = vshrl.u32 %v1162_v18, 16 }
  0x25   : > { %v303_v10 = vrot.slane %v301_v47, 1 }
  0x26   : > { %v396_v57 = vor.u32 %v394_v53, %v1187_v32 }
  0x27   : > { %v304_v54 = vsel %vm236_vm0, %v299_v58, %v303_v10  ;;  %v461_v58 = vshrl.u32 %v1206_v42, 16 }
  0x28   : > { %445 = vrot.lane.b32.xlu0 %v1142_v2, %s1099_s22  ;;  %430 = vrot.lane.b32.xlu2 %v409_v52, %s1098_s21  ;;  %v416_v52 = vrot.slane %v414_v50, 1  ;;  %v401_v44 = vsel %vm236_vm0, %v396_v57, %v1197_v36  ;;  %v364_v36 = vor.u32 %v362_v63, %v360_v14 }
  0x29   : > { %305 = vrot.lane.b32.xlu1 %v248_v55, %s1096_s19  ;;  %v463_v61 = vor.u32 %v461_v58, %v1230_v59  ;;  %v912_v59 = vld [vmem:[%s1527_s1 + $0x28] sm:$0xff] }
  0x2a   : > { %v417_v55 = vsel %vm236_vm0, %v412_v48, %v416_v52  ;;  %1012 = vmatpush.bf16.msra.mxu2 %v912_v59  ;;  %1013 = vmatpush.bf16.msra.mxu3 %v912_v59 }
  0x2b   : > { %1011 = vmatpush.bf16.msra.mxu1 %v912_v59  ;;  %641 = vmatpush.bf16.msra.mxu0 %v912_v59 }
  0x30   : > { %481 = vrot.lane.b32.xlu0 %v460_v0, %s1097_s20  ;;  %309 = vrot.lane.b32.xlu2 %v1240_v3, %s1096_s19  ;;  %v378_v0 = vshrl.u32 %v1248_v12, 16 }
  0x31   : > { %335 = vrot.lane.b32.xlu1 %v998_v9, %s1095_s18  ;;  %v909_v9 = vld [vmem:[%s1527_s1 + $0x10] sm:$0xff] }
  0x32   : > { %v380_v4 = vor.u32 %v378_v0, %v376_v26 }
  0x34   : > { %v385_v8 = vsel %vm236_vm0, %v380_v4, %v1165_v20  ;;  %v908_v20 = vld [vmem:[%s1527_s1 + $0x8] sm:$0xff] }
  0x38   : > { %331 = vrot.lane.b32.xlu0 %v994_v56, %s1095_s18  ;;  %418 = vrot.lane.b32.xlu2 %v361_v19, %s1098_s21  ;;  %v192_v56 = vld [vmem:[%s1135_s17 + $0x48] sm:$0x1] }
  0x39   : > { %437 = vrot.lane.b32.xlu1 %v1193_v34, %s1099_s22 }
  0x40   : > { %422 = vrot.lane.b32.xlu0 %v377_v31, %s1098_s21  ;;  %441 = vrot.lane.b32.xlu2 %v1220_v51, %s1099_s22 }
  0x41   : > { %473 = vrot.lane.b32.xlu1 %v272_v38, %s1097_s20 }
  0x48   : > { %469 = vrot.lane.b32.xlu0 %v256_v46, %s1097_s20  ;;  %315 = vrot.lane.b32.xlu2 %v1171_v22, %s1096_s19  ;;  %v454_v22 = vunpack.c.l.b16 %v192_v56 }
  0x49   : > { %341 = vrot.lane.b32.xlu1 %v1162_v18, %s1095_s18 }
  0x4a   : > { %v455_v60 = vpack.c.b16 %v454_v22, %v454_v22 }
  0x4c   : > { %v465_v18 = vshll.u32 %v455_v60, 16 }
  0x50   : > { %319 = vrot.lane.b32.xlu0 %v304_v54, %s1096_s19  ;;  %345 = vrot.lane.b32.xlu2 %v1182_v29, %s1095_s18  ;;  %v467_v29 = vrot.slane %v465_v18, 1 }
  0x51   : > { %432 = vrot.lane.b32.xlu1 %v417_v55, %s1098_s21 }
  0x52   : > { %v468_v32 = vsel %vm236_vm0, %v463_v61, %v467_v29 }
  0x58   : > { %428 = vrot.lane.b32.xlu0 %v401_v44, %s1098_s21  ;;  %447 = vrot.lane.b32.xlu2 %v1148_v6, %s1099_s22 }
  0x59   : > { %479 = vrot.lane.b32.xlu1 %v1190_v33, %s1097_s20  ;;  %v911_v33 = vld [vmem:[%s1527_s1 + $0x20] sm:$0xff] }
  0x5a   : > { %1015 = vmatpush.bf16.msra.mxu2 %v911_v33  ;;  %1016 = vmatpush.bf16.msra.mxu3 %v911_v33 }
  0x5b   : > { %1014 = vmatpush.bf16.msra.mxu1 %v911_v33  ;;  %642 = vmatpush.bf16.msra.mxu0 %v911_v33 }
  0x5e   : > { %1018 = vmatpush.bf16.msra.mxu2 %v910_v5  ;;  %1019 = vmatpush.bf16.msra.mxu3 %v910_v5 }
  0x5f   : > { %1017 = vmatpush.bf16.msra.mxu1 %v910_v5  ;;  %643 = vmatpush.bf16.msra.mxu0 %v910_v5 }
  0x60   : > { %451 = vrot.lane.b32.xlu0 %v1206_v42, %s1099_s22  ;;  %483 = vrot.lane.b32.xlu2 %v468_v32, %s1097_s20  ;;  %v369_v42 = vsel %vm236_vm0, %v364_v36, %v1251_v15 }
  0x61   : > { %311 = vrot.lane.b32.xlu1 %v272_v38, %s1096_s19 }
  0x62   : > { %1021 = vmatpush.bf16.msra.mxu2 %v909_v9  ;;  %1022 = vmatpush.bf16.msra.mxu3 %v909_v9 }
  0x63   : > { %1020 = vmatpush.bf16.msra.mxu1 %v909_v9  ;;  %644 = vmatpush.bf16.msra.mxu0 %v909_v9 }
  0x66   : > { %1024 = vmatpush.bf16.msra.mxu2 %v908_v20  ;;  %1025 = vmatpush.bf16.msra.mxu3 %v908_v20 }
  0x67   : > { %1023 = vmatpush.bf16.msra.mxu1 %v908_v20  ;;  %645 = vmatpush.bf16.msra.mxu0 %v908_v20 }
  0x68   : > { %307 = vrot.lane.b32.xlu0 %v256_v46, %s1096_s19  ;;  %333 = vrot.lane.b32.xlu2 %v1235_v62, %s1095_s18 }
  0x69   : > { %420 = vrot.lane.b32.xlu1 %v369_v42, %s1098_s21 }
  0x6a   : > { %1027 = vmatpush.bf16.msra.mxu2 %v907_v11  ;;  %1028 = vmatpush.bf16.msra.mxu3 %v907_v11 }
  0x6b   : > { %1026 = vmatpush.bf16.msra.mxu1 %v907_v11  ;;  %646 = vmatpush.bf16.msra.mxu0 %v907_v11 }
  0x70   : > { %337 = vrot.lane.b32.xlu0 %v1248_v12, %s1095_s18  ;;  %424 = vrot.lane.b32.xlu2 %v385_v8, %s1098_s21 }
  0x71   : > { %443 = vrot.lane.b32.xlu1 %v1139_v1, %s1099_s22 }
  0x72   : > { %v478_v62 = vpop.permute.xlu2 %477 }
  0x78   : > { %439 = vrot.lane.b32.xlu0 %v1212_v45, %s1099_s22  ;;  %471 = vrot.lane.b32.xlu2 %v1240_v3, %s1097_s20 }
  0x7a   : > { %v427_v12 = vpop.permute.xlu2 %426 }
  0x80   : > { %475 = vrot.lane.b32.xlu0 %v1168_v21, %s1097_s20 }
  0x82   : > { %v340_v13 = vpop.permute.xlu1 %339  ;;  %v431_v14 = vpop.permute.xlu2 %430 }
  0x8a   : > { %v314_v15 = vpop.permute.xlu0 %313  ;;  %v310_v17 = vpop.permute.xlu2 %309 }
  0x8b   : > { %v344_v16 = vpop.permute.xlu1 %343  ;;  %v495_v23 = vsel %vm485_vm1, %v1139_v1, %v314_v15  ;;  %v491_v47 = vsel %vm485_vm1, %v1212_v45, %v310_v17 }
  0x8c   : > { %v512_v24 = vsel %vm502_vm2, %v495_v23, %v340_v13 }
  0x8d   : > { %v529_v27 = vsel %vm519_vm3, %v512_v24, %v427_v12 }
  0x92   : > { %v318_v19 = vpop.permute.xlu0 %317  ;;  %v419_v21 = vpop.permute.xlu2 %418 }
  0x93   : > { %v450_v3 = vpop.permute.xlu1 %449  ;;  %v499_v26 = vsel %vm485_vm1, %v1148_v6, %v318_v19 }
  0x94   : > { %v516_v31 = vsel %vm502_vm2, %v499_v26, %v344_v16 }
  0x95   : > { %v533_v37 = vsel %vm519_vm3, %v516_v31, %v431_v14 }
  0x96   : > { %v550_v6 = vsel %vm536_vm5, %v533_v37, %v450_v3 }
  0x9a   : > { %v446_v28 = vpop.permute.xlu0 %445  ;;  %v442_v40 = vpop.permute.xlu2 %441 }
  0x9b   : > { %v546_v30 = vsel %vm536_vm5, %v529_v27, %v446_v28  ;;  %v306_v35 = vpop.permute.xlu1 %305 }
  0x9c   : > { %v563_v1 = vsel %vm553_vm4, %v546_v30, %v478_v62  ;;  %v487_v10 = vsel %vm485_vm1, %v1178_v25, %v306_v35 }
  0x9d   : > { %900 = vmatmul.msk.bf16.vlgmr.msra.gmra.mxu2 %vm622_vm6, %v563_v1  ;;  %v1086_v1 = vld [vmem:[%s1528_s2] ss:$0 sm:$0xff] }
  0xa2   : > { %v482_v38 = vpop.permute.xlu0 %481  ;;  %v316_v49 = vpop.permute.xlu2 %315 }
  0xa3   : > { %v567_v39 = vsel %vm553_vm4, %v550_v6, %v482_v38  ;;  %v336_v41 = vpop.permute.xlu1 %335  ;;  %v497_v29 = vsel %vm485_vm1, %v1142_v2, %v316_v49 }
  0xa4   : > { %902 = vmatmul.msk.bf16.vlgmr.msra.gmra.mxu3 %vm622_vm6, %v567_v39  ;;  %v508_v50 = vsel %vm502_vm2, %v491_v47, %v336_v41 }
  0xaa   : > { %v332_v43 = vpop.permute.xlu0 %331  ;;  %v346_v22 = vpop.permute.xlu2 %345 }
  0xab   : > { %v438_v46 = vpop.permute.xlu1 %437  ;;  %v504_v54 = vsel %vm502_vm2, %v487_v10, %v332_v43 }
  0xac   : > { %v521_v45 = vsel %vm519_vm3, %v504_v54, %v419_v21 }
  0xad   : > { %v538_v57 = vsel %vm536_vm5, %v521_v45, %v438_v46 }
  0xb2   : > { %v423_v48 = vpop.permute.xlu0 %422  ;;  %v448_v58 = vpop.permute.xlu2 %447 }
  0xb3   : > { %v525_v52 = vsel %vm519_vm3, %v508_v50, %v423_v48  ;;  %v474_v55 = vpop.permute.xlu1 %473 }
  0xb4   : > { %v542_v53 = vsel %vm536_vm5, %v525_v52, %v442_v40 }
  0xb5   : > { %v559_v56 = vsel %vm553_vm4, %v542_v53, %v474_v55 }
  0xb6   : > { %898 = vmatmul.msk.bf16.vlgmr.msra.gmra.mxu1 %vm622_vm6, %v559_v56 }
  0xba   : > { %v470_v60 = vpop.permute.xlu0 %469  ;;  %v484_v59 = vpop.permute.xlu2 %483 }
  0xbb   : > { %v555_v25 = vsel %vm553_vm4, %v538_v57, %v470_v60  ;;  %v342_v44 = vpop.permute.xlu1 %341 }
  0xbc   : > { %896 = vmatmul.msk.bf16.vlgmr.msra.gmra.mxu0 %vm622_vm6, %v555_v25  ;;  %v514_v32 = vsel %vm502_vm2, %v497_v29, %v342_v44 }
  0xc2   : > { %v320_v18 = vpop.permute.xlu0 %319  ;;  %v334_v20 = vpop.permute.xlu2 %333 }
  0xc3   : > { %v433_v61 = vpop.permute.xlu1 %432  ;;  %v501_v0 = vsel %vm485_vm1, %v1151_v7, %v320_v18 }
  0xc4   : > { %v518_v5 = vsel %vm502_vm2, %v501_v0, %v346_v22 }
  0xc5   : > { %v535_v2 = vsel %vm519_vm3, %v518_v5, %v433_v61 }
  0xca   : > { %v429_v63 = vpop.permute.xlu0 %428  ;;  %v425_v12 = vpop.permute.xlu2 %424 }
  0xcb   : > { %v531_v36 = vsel %vm519_vm3, %v514_v32, %v429_v63  ;;  %v480_v42 = vpop.permute.xlu1 %479 }
  0xcc   : > { %v548_v33 = vsel %vm536_vm5, %v531_v36, %v448_v58 }
  0xcd   : > { %v565_v4 = vsel %vm553_vm4, %v548_v33, %v480_v42 }
  0xce   : > { %901 = vmatmul.msk.bf16.gmra.mxu2 %vm622_vm6, %v565_v4 }
  0xd2   : > { %v452_v8 = vpop.permute.xlu0 %451  ;;  %v472_v19 = vpop.permute.xlu2 %471 }
  0xd3   : > { %v552_v9 = vsel %vm536_vm5, %v535_v2, %v452_v8  ;;  %v312_v11 = vpop.permute.xlu1 %311 }
  0xd4   : > { %v569_v62 = vsel %vm553_vm4, %v552_v9, %v484_v59  ;;  %v493_v17 = vsel %vm485_vm1, %v1220_v51, %v312_v11 }
  0xd5   : > { %903 = vmatmul.msk.bf16.gmra.mxu3 %vm622_vm6, %v569_v62 }
  0xda   : > { %v308_v7 = vpop.permute.xlu0 %307 }
  0xdb   : > { %v489_v14 = vsel %vm485_vm1, %v1193_v34, %v308_v7  ;;  %v421_v15 = vpop.permute.xlu1 %420 }
  0xdc   : > { %v506_v16 = vsel %vm502_vm2, %v489_v14, %v334_v20 }
  0xdd   : > { %v523_v23 = vsel %vm519_vm3, %v506_v16, %v421_v15 }
  0xe2   : > { %v338_v13 = vpop.permute.xlu0 %337 }
  0xe3   : > { %v510_v26 = vsel %vm502_vm2, %v493_v17, %v338_v13  ;;  %v444_v27 = vpop.permute.xlu1 %443 }
  0xe4   : > { %v527_v34 = vsel %vm519_vm3, %v510_v26, %v425_v12 }
  0xe5   : > { %v544_v28 = vsel %vm536_vm5, %v527_v34, %v444_v27 }
  0xea   : > { %v440_v3 = vpop.permute.xlu0 %439 }
  0xeb   : > { %v540_v24 = vsel %vm536_vm5, %v523_v23, %v440_v3 }
  0xec   : > { %v557_v21 = vsel %vm553_vm4, %v540_v24, %v472_v19 }
  0xed   : > { %897 = vmatmul.msk.bf16.gmra.mxu0 %vm622_vm6, %v557_v21 }
  0xf2   : > { %v476_v30 = vpop.permute.xlu0 %475 }
  0xf3   : > { %v561_v51 = vsel %vm553_vm4, %v544_v28, %v476_v30 }
  0xf4   : > { %899 = vmatmul.msk.bf16.gmra.mxu1 %vm622_vm6, %v561_v51 }
 0x120   : > { %v668_v31 = vpop.f32.mrf.mxu2 }
 0x121   : > { %v1400_v35 = vadd.f32 %v1086_v1, %v668_v31 }
 0x123   : > { %v696_v38 = vmax.f32 %v1400_v35, 0.0 }
 0x127   : > { %v678_v57 = vpop.f32.mrf.mxu3 }
 0x128   : > { %v670_v37 = vpop.f32.mrf.mxu2  ;;  %v1466_v19 = vadd.f32 %v1086_v1, %v678_v57 }
 0x129   : > { %v1402_v6 = vadd.f32 %v1086_v1, %v670_v37 }
 0x12a   : > { %v700_v3 = vmax.f32 %v1466_v19, 0.0 }
 0x12b   : > { %v697_v39 = vmax.f32 %v1402_v6, 0.0 }
 0x12d   : > { %v1056_v40 = vpack.i.bf16 %v697_v39, %v696_v38 }
 0x12f   : > { %1057 = vrot.lane.b32.xlu2 %v1056_v40, %s1100_s10  ;;  %v680_v29 = vpop.f32.mrf.mxu3 }
 0x130   : > { %v1460_v15 = vadd.f32 %v1086_v1, %v680_v29 }
 0x132   : > { %v701_v23 = vmax.f32 %v1460_v15, 0.0 }
 0x133   : > { %v658_v41 = vpop.f32.mrf.mxu1 }
 0x134   : > { %v1411_v46 = vadd.f32 %v1086_v1, %v658_v41  ;;  %v1076_v24 = vpack.i.bf16 %v701_v23, %v700_v3 }
 0x136   : > { %v692_v50 = vmax.f32 %v1411_v46, 0.0 }
 0x139   : > { %v648_v43 = vpop.f32.mrf.mxu0 }
 0x13a   : > { %v1417_v48 = vadd.f32 %v1086_v1, %v648_v43 }
 0x13b   : > { %v660_v47 = vpop.f32.mrf.mxu1 }
 0x13c   : > { %v1413_v49 = vadd.f32 %v1086_v1, %v660_v47  ;;  %v688_v55 = vmax.f32 %v1417_v48, 0.0 }
 0x13e   : > { %v693_v10 = vmax.f32 %v1413_v49, 0.0 }
 0x140   : > { %v1051_v52 = vpack.i.bf16 %v693_v10, %v692_v50 }
 0x141   : > { %v650_v54 = vpop.f32.mrf.mxu0 }
 0x142   : > { %v1423_v53 = vadd.f32 %v1086_v1, %v650_v54  ;;  %1052 = vrot.lane.b32.xlu0 %v1051_v52, %s1100_s10 }
 0x144   : > { %v689_v56 = vmax.f32 %v1423_v53, 0.0 }
 0x146   : > { %v1046_v45 = vpack.i.bf16 %v689_v56, %v688_v55 }
 0x148   : > { %1047 = vrot.lane.b32.xlu1 %v1046_v45, %s1100_s10 }
 0x151   : > { %v673_v22 = vpop.f32.mrf.mxu2 }
 0x152   : > { %v1433_v60 = vadd.f32 %v1086_v1, %v673_v22 }
 0x154   : > { %v698_v58 = vmax.f32 %v1433_v60, 0.0 }
 0x158   : > { %v683_v32 = vpop.f32.mrf.mxu3 }
 0x159   : > { %v675_v25 = vpop.f32.mrf.mxu2  ;;  %v1451_v62 = vadd.f32 %v1086_v1, %v683_v32 }
 0x15a   : > { %v1435_v44 = vadd.f32 %v1086_v1, %v675_v25 }
 0x15b   : > { %v702_v14 = vmax.f32 %v1451_v62, 0.0 }
 0x15c   : > { %v699_v18 = vmax.f32 %v1435_v44, 0.0 }
 0x15e   : > { %v1071_v61 = vpack.i.bf16 %v699_v18, %v698_v58 }
 0x160   : > { %1072 = vrot.lane.b32.xlu0 %v1071_v61, %s1100_s10  ;;  %v685_v42 = vpop.f32.mrf.mxu3 }
 0x161   : > { %v1447_v2 = vadd.f32 %v1086_v1, %v685_v42 }
 0x163   : > { %v703_v11 = vmax.f32 %v1447_v2, 0.0 }
 0x165   : > { %v1081_v17 = vpack.i.bf16 %v703_v11, %v702_v14 }
 0x16a   : > { %v653_v63 = vpop.f32.mrf.mxu0 }
 0x16b   : > { %v1444_v36 = vadd.f32 %v1086_v1, %v653_v63 }
 0x16d   : > { %v690_v4 = vmax.f32 %v1444_v36, 0.0 }
 0x171   : > { %v663_v59 = vpop.f32.mrf.mxu1 }
 0x172   : > { %v655_v0 = vpop.f32.mrf.mxu0  ;;  %v1449_v9 = vadd.f32 %v1086_v1, %v663_v59 }
 0x173   : > { %v656_v33 = vadd.f32 %v1086_v1, %v655_v0 }
 0x174   : > { %v694_v12 = vmax.f32 %v1449_v9, 0.0 }
 0x175   : > { %v691_v5 = vmax.f32 %v656_v33, 0.0 }
 0x177   : > { %v1061_v8 = vpack.i.bf16 %v691_v5, %v690_v4 }
 0x179   : > { %1062 = vrot.lane.b32.xlu2 %v1061_v8, %s1100_s10  ;;  %v665_v20 = vpop.f32.mrf.mxu1 }
 0x17a   : > { %v1454_v7 = vadd.f32 %v1086_v1, %v665_v20 }
 0x17c   : > { %v695_v13 = vmax.f32 %v1454_v7, 0.0 }
 0x17e   : > { %v1066_v16 = vpack.i.bf16 %v695_v13, %v694_v12 }
 0x180   : > { %1067 = vrot.lane.b32.xlu1 %v1066_v16, %s1100_s10 }
 0x181   : > { %1082 = vrot.lane.b32.xlu2 %v1081_v17, %s1100_s10 }
 0x188   : > { %1077 = vrot.lane.b32.xlu1 %v1076_v24, %s1100_s10 }
 0x189   : > { %v1058_v26 = vpop.permute.xlu2 %1057 }
 0x18a   : > { %v1060_v21 = vunpack.i.h.bf16 %v1058_v26  ;;  %v1059_v34 = vunpack.i.l.bf16 %v1058_v26 }
 0x18c   : > { %v777_v27 = vmax.f32 %v697_v39, %v1060_v21  ;;  %v776_v28 = vmax.f32 %v696_v38, %v1059_v34 }
 0x18e   : > { %v788_v30 = vmax.f32 %v776_v28, %v777_v27 }
 0x190   : > { %v796_v51 = vpack.c.bf16 %v788_v30, %v788_v30 }
 0x192   : > { %805 = vst.msk [vmem:[%s1485_s16 + $0x10] sm:$0xf] %vm800_vm7, %v796_v51 }
 0x1b4   : > { %v1053_v31 = vpop.permute.xlu0 %1052 }
 0x1b5   : > { %v1055_v1 = vunpack.i.h.bf16 %v1053_v31  ;;  %v1054_v37 = vunpack.i.l.bf16 %v1053_v31 }
 0x1b7   : > { %v773_v35 = vmax.f32 %v693_v10, %v1055_v1  ;;  %v772_v6 = vmax.f32 %v692_v50, %v1054_v37 }
 0x1b9   : > { %v786_v38 = vmax.f32 %v772_v6, %v773_v35 }
 0x1ba   : > { %v1048_v39 = vpop.permute.xlu1 %1047 }
 0x1bb   : > { %v794_v40 = vpack.c.bf16 %v786_v38, %v786_v38  ;;  %v1050_v41 = vunpack.i.h.bf16 %v1048_v39  ;;  %v1049_v43 = vunpack.i.l.bf16 %v1048_v39 }
 0x1bd   : > { %803 = vst.msk [vmem:[%s1485_s16 + $0x8] sm:$0xf] %vm800_vm7, %v794_v40  ;;  %v769_v47 = vmax.f32 %v689_v56, %v1050_v41  ;;  %v768_v52 = vmax.f32 %v688_v55, %v1049_v43 }
 0x1bf   : > { %v784_v54 = vmax.f32 %v768_v52, %v769_v47 }
 0x1c1   : > { %v792_v45 = vpack.c.bf16 %v784_v54, %v784_v54 }
 0x1c3   : > { %801 = vst.msk [vmem:[%s1485_s16] sm:$0xf] %vm800_vm7, %v792_v45 }
 0x1d2   : > { %v1073_v46 = vpop.permute.xlu0 %1072 }
 0x1d3   : > { %v1075_v49 = vunpack.i.h.bf16 %v1073_v46  ;;  %v1074_v50 = vunpack.i.l.bf16 %v1073_v46  ;;  %v1063_v10 = vpop.permute.xlu2 %1062 }
 0x1d4   : > { %v1065_v22 = vunpack.i.h.bf16 %v1063_v10  ;;  %v1064_v57 = vunpack.i.l.bf16 %v1063_v10 }
 0x1d5   : > { %v779_v25 = vmax.f32 %v699_v18, %v1075_v49  ;;  %v778_v53 = vmax.f32 %v698_v58, %v1074_v50 }
 0x1d6   : > { %v771_v48 = vmax.f32 %v691_v5, %v1065_v22  ;;  %v770_v55 = vmax.f32 %v690_v4, %v1064_v57 }
 0x1d7   : > { %v789_v56 = vmax.f32 %v778_v53, %v779_v25 }
 0x1d8   : > { %v785_v61 = vmax.f32 %v770_v55, %v771_v48 }
 0x1d9   : > { %v797_v29 = vpack.c.bf16 %v789_v56, %v789_v56 }
 0x1da   : > { %v793_v32 = vpack.c.bf16 %v785_v61, %v785_v61 }
 0x1db   : > { %806 = vst.msk [vmem:[%s1485_s16 + $0x14] sm:$0xf] %vm800_vm7, %v797_v29  ;;  %v1083_v63 = vpop.permute.xlu2 %1082 }
 0x1dc   : > { %802 = vst.msk [vmem:[%s1485_s16 + $0x4] sm:$0xf] %vm800_vm7, %v793_v32  ;;  %v1085_v36 = vunpack.i.h.bf16 %v1083_v63  ;;  %v1084_v59 = vunpack.i.l.bf16 %v1083_v63 }
 0x1de   : > { %v783_v44 = vmax.f32 %v703_v11, %v1085_v36  ;;  %v782_v18 = vmax.f32 %v702_v14, %v1084_v59 }
 0x1e0   : > { %v791_v0 = vmax.f32 %v782_v18, %v783_v44 }
 0x1e2   : > { %v799_v60 = vpack.c.bf16 %v791_v0, %v791_v0 }
 0x1e4   : > { %808 = vst.msk [vmem:[%s1485_s16 + $0x1c] sm:$0xf] %vm800_vm7, %v799_v60 }
 0x1f2   : > { %v1068_v58 = vpop.permute.xlu1 %1067 }
 0x1f3   : > { %v1070_v33 = vunpack.i.h.bf16 %v1068_v58  ;;  %v1069_v42 = vunpack.i.l.bf16 %v1068_v58 }
 0x1f5   : > { %v775_v4 = vmax.f32 %v695_v13, %v1070_v33  ;;  %v774_v5 = vmax.f32 %v694_v12, %v1069_v42 }
 0x1f7   : > { %v787_v2 = vmax.f32 %v774_v5, %v775_v4 }
 0x1f9   : > { %v795_v8 = vpack.c.bf16 %v787_v2, %v787_v2 }
 0x1fa   : > { %v1078_v62 = vpop.permute.xlu1 %1077 }
 0x1fb   : > { %804 = vst.msk [vmem:[%s1485_s16 + $0xc] sm:$0xf] %vm800_vm7, %v795_v8  ;;  %v1080_v20 = vunpack.i.h.bf16 %v1078_v62  ;;  %v1079_v11 = vunpack.i.l.bf16 %v1078_v62 }
 0x1fd   : > { %v781_v14 = vmax.f32 %v701_v23, %v1080_v20  ;;  %v780_v16 = vmax.f32 %v700_v3, %v1079_v11 }
 0x1ff   : > { %v790_v17 = vmax.f32 %v780_v16, %v781_v14 }
 0x201   : > { %v798_v24 = vpack.c.bf16 %v790_v17, %v790_v17 }
 0x203   : > { %807 = vst.msk [vmem:[%s1485_s16 + $0x18] sm:$0xf] %vm800_vm7, %v798_v24 }
 0x204 PF: > { %s13_s12 = sadd.s32 1, %s1093_s12  }
 0x205   : > { %p10_p4 = scmp.ge.s32.totalorder %s13_s12, 4  }
 0x207   :  { %12 = sbr.rel (!%p10_p4) target bundleno = 1 (0x1), region = 62 }

// kernel: cnn_forward.4
= control target key start
LH: loop header
LB: loop body
LE: loop exit
PB: predicated region body
PF: predicated region fallthrough
CT: control target
= control target key end

     0   :  { %s857_s12 = smov 0   ;;  %s1029_s0 = inlined_call_operand.vmem [shape: bf16[2,88,32], index: 0, kind: input, shape index: {}]   ;;  %s1030_s1 = inlined_call_operand.vmem [shape: bf16[192,64], index: 1, kind: input, shape index: {}]   ;;  %s1031_s2 = inlined_call_operand.vmem [shape: f32[1,64], index: 2, kind: input, shape index: {}]   ;;  %s1032_s3 = inlined_call_operand.vmem [shape: bf16[2,4,8,32], index: 3, kind: output, shape index: {}]  }
   0x1 LB: > { %s654_s13 = sadd.s32 4294967295, %s832_s12   ;;  %p658_p0 = scmp.ge.s32.totalorder %s832_s12, 1  ;;  %s832_s12 = sphi %s857_s12, %s13_s12  }
   0x2   : > { %p137_p1 = scmp.lt.s32.totalorder %s832_s12, 3 }
   0x4   : > { %p138_p2 = pnand %p658_p0, %p137_p1 }
   0x5   : > { %p161_p3 = scmp.lt.s32.totalorder (!%p138_p2), %s654_s13, 1  ;;  %s834_s18 = smov (!%p138_p2), 64  }
   0x6   : > { %141 = sbr.rel (%p138_p2) target bundleno = 438 (0x1b6), region = 32  ;;  %s835_s19 = smov (!%p138_p2), 32  }
   0x7   : > { %s836_s30 = smov (!%p138_p2), 96  }
   0xb   : > { %s1034_s13 = smov (!%p161_p3, %s654_s13), 1  ;;  %vm208_vm0 = vsmask.f32 7424  ;;  %v724_v30 = vld [vmem:[%s1030_s1 + $0x38] sm:$0xff]  ;;  %v723_v35 = vld [vmem:[%s1030_s1 + $0x30] sm:$0xff]  ;;  %v722_v49 = vld [vmem:[%s1030_s1 + $0x28] sm:$0xff] }
   0xc   : > { %s793_s14 = smul.u32 44, %s1034_s13  ;;  %v728_v33 = vld [vmem:[%s1030_s1 + $0x58] sm:$0xff]  ;;  %779 = vmatpush.bf16.msra.mxu2 %v724_v30  ;;  %480 = vmatpush.bf16.msra.mxu0 %v724_v30  ;;  %v727_v40 = vld [vmem:[%s1030_s1 + $0x50] sm:$0xff]  ;;  %v721_v57 = vld [vmem:[%s1030_s1 + $0x20] sm:$0xff]  ;;  %vm337_vm1 = vcmask 261120   ;;  %vm346_vm2 = vcmask 523264  }
   0xd   : > { %787 = vmatpush.bf16.msra.mxu3 %v728_v33  ;;  %513 = vmatpush.bf16.msra.mxu1 %v728_v33  ;;  %vm355_vm3 = vcmask 785408   ;;  %s716_s22 = sshll.u32 %s1034_s13, 4  ;;  %vm594_vm4 = vcmask 257024  }
   0xe   : > { %s871_s17 = scalar_lea.vmem %s1029_s0, %s793_s14  ;;  %s170_s25 = scalar_lea.vmem %s1032_s3, %s716_s22 }
   0xf   : > { %v874_v0 = vld [vmem:[%s871_s17 + $0x10] sm:$0xff]   ;;  %v877_v1 = vld [vmem:[%s871_s17 + $0x18] sm:$0xff]   ;;  %v880_v2 = vld [vmem:[%s871_s17 + $0x20] sm:$0xff]  }
  0x10   : > { %v225_v3 = vshll.u32 %v874_v0, 16  ;;  %v229_v4 = vshrl.u32 %v874_v0, 16  ;;  %v233_v5 = vshll.u32 %v877_v1, 16  ;;  %v237_v6 = vshrl.u32 %v877_v1, 16  ;;  %v773_v7 = vld [vmem:[%s871_s17 + $0x14] sm:$0xff]   ;;  %v888_v8 = vld [vmem:[%s871_s17 + $0x1c] sm:$0xff]   ;;  %780 = vmatpush.bf16.msra.mxu2 %v723_v35  ;;  %481 = vmatpush.bf16.msra.mxu0 %v723_v35 }
  0x11   : > { %v321_v9 = vshll.u32 %v880_v2, 16  ;;  %v770_v10 = vld [vmem:[%s871_s17 + $0x4] sm:$0xff]   ;;  %v286_v13 = vshll.u32 %v773_v7, 16  ;;  %v180_v14 = vld [vmem:[%s871_s17 + $0x20] sm:$0x1]  ;;  %v290_v16 = vshrl.u32 %v773_v7, 16  ;;  %788 = vmatpush.bf16.msra.mxu3 %v727_v40  ;;  %514 = vmatpush.bf16.msra.mxu1 %v727_v40 }
  0x12   : > { %v892_v11 = vrot.slane %v225_v3, 1  ;;  %v235_v12 = vrot.slane %v233_v5, 1  ;;  %v294_v17 = vshll.u32 %v888_v8, 16  ;;  %259 = vrot.lane.b32.xlu2 %v770_v10, %s834_s18  ;;  %v206_v21 = vunpack.c.l.b16 %v180_v14  ;;  %v906_v24 = vld [vmem:[%s871_s17 + $0xc] sm:$0xff]   ;;  %v909_v25 = vld [vmem:[%s871_s17] sm:$0xff]  }
  0x13   : > { %v895_v15 = vrot.slane %v321_v9, 1  ;;  %v900_v20 = vrot.slane %v286_v13, 1  ;;  %v273_v28 = vshll.u32 %v770_v10, 16  ;;  %v915_v29 = vld [vmem:[%s871_s17 + $0x8] sm:$0xff]   ;;  %v182_v32 = vld [vmem:[%s871_s17 + $0x24] sm:$0x1] }
  0x14   : > { %v231_v18 = vor.u32 %v229_v4, %v892_v11  ;;  %v239_v19 = vor.u32 %v237_v6, %v235_v12  ;;  %v296_v27 = vrot.slane %v294_v17, 1  ;;  %v207_v31 = vpack.c.b16 %v206_v21, %v206_v21  ;;  %v184_v34 = vld [vmem:[%s871_s17 + $0x28] sm:$0x1]  ;;  %781 = vmatpush.bf16.msra.mxu2 %v722_v49  ;;  %482 = vmatpush.bf16.msra.mxu0 %v722_v49  ;;  %v725_v17 = vld [vmem:[%s1030_s1 + $0x40] sm:$0xff] }
  0x15   : > { %v292_v26 = vor.u32 %v290_v16, %v900_v20  ;;  %v271_v36 = vshrl.u32 %v770_v10, 16  ;;  %v210_v37 = vshrl.u32 %v909_v25, 16  ;;  %v212_v38 = vshll.u32 %v909_v25, 16 }
  0x16   : > { %v236_v22 = vsel %vm208_vm0, %v231_v18, %v235_v12  ;;  %v324_v23 = vsel %vm208_vm0, %v239_v19, %v895_v15  ;;  %v217_v39 = vshll.u32 %v915_v29, 16  ;;  %v275_v42 = vrot.slane %v273_v28, 1  ;;  %v719_v18 = vld [vmem:[%s1030_s1 + $0x10] sm:$0xff] }
  0x17   : > { %249 = vrot.lane.b32.xlu0 %v236_v22, %s835_s19  ;;  %333 = vrot.lane.b32.xlu1 %v324_v23, %s835_s19  ;;  %v297_v41 = vsel %vm208_vm0, %v292_v26, %v296_v27  ;;  %v278_v43 = vshll.u32 %v906_v24, 16  ;;  %v268_v44 = vunpack.c.l.b16 %v182_v32  ;;  %v241_v45 = vshll.u32 %v207_v31, 16 }
  0x18   : > { %v318_v46 = vunpack.c.l.b16 %v184_v34  ;;  %v214_v47 = vrot.slane %v212_v38, 1  ;;  %v219_v48 = vrot.slane %v217_v39, 1  ;;  %v276_v51 = vor.u32 %v275_v42, %v271_v36  ;;  %782 = vmatpush.bf16.msra.mxu2 %v721_v57  ;;  %483 = vmatpush.bf16.msra.mxu0 %v721_v57 }
  0x19   : > { %v280_v52 = vrot.slane %v278_v43, 1  ;;  %v243_v53 = vrot.slane %v241_v45, 1  ;;  %v269_v54 = vpack.c.b16 %v268_v44, %v268_v44  ;;  %v298_v58 = vshrl.u32 %v888_v8, 16 }
  0x1a   : > { %v215_v50 = vor.u32 %v214_v47, %v210_v37  ;;  %v319_v55 = vpack.c.b16 %v318_v46, %v318_v46  ;;  %v325_v59 = vshrl.u32 %v880_v2, 16  ;;  %v221_v3 = vshrl.u32 %v915_v29, 16 }
  0x1b   : > { %v281_v60 = vsel %vm208_vm0, %v276_v51, %v280_v52  ;;  %v244_v61 = vsel %vm208_vm0, %v239_v19, %v243_v53  ;;  %v302_v62 = vshll.u32 %v269_v54, 16  ;;  %v300_v4 = vor.u32 %v298_v58, %v296_v27  ;;  %v718_v19 = vld [vmem:[%s1030_s1 + $0x8] sm:$0xff] }
  0x1c   : > { %v220_v56 = vsel %vm208_vm0, %v215_v50, %v219_v48  ;;  %v329_v63 = vshll.u32 %v319_v55, 16  ;;  %v327_v6 = vor.u32 %v325_v59, %v895_v15  ;;  %v223_v9 = vor.u32 %v221_v3, %v219_v48  ;;  %v726_v15 = vld [vmem:[%s1030_s1 + $0x48] sm:$0xff] }
  0x1d   : > { %245 = vrot.lane.b32.xlu2 %v220_v56, %s835_s19  ;;  %v304_v5 = vrot.slane %v302_v62, 1  ;;  %v282_v13 = vshrl.u32 %v906_v24, 16  ;;  %789 = vmatpush.bf16.msra.mxu3 %v726_v15 }
  0x1e   : > { %v228_v14 = vsel %vm208_vm0, %v223_v9, %v892_v11  ;;  %v720_v11 = vld [vmem:[%s1030_s1 + $0x18] sm:$0xff]  ;;  %515 = vmatpush.bf16.msra.mxu1 %v726_v15 }
  0x1f   : > { %263 = vrot.lane.b32.xlu0 %v773_v7, %s834_s18  ;;  %310 = vrot.lane.b32.xlu1 %v297_v41, %s836_s30  ;;  %v331_v7 = vrot.slane %v329_v63, 1  ;;  %v305_v10 = vsel %vm208_vm0, %v300_v4, %v304_v5  ;;  %v284_v16 = vor.u32 %v282_v13, %v280_v52  ;;  %v825_v52 = vld [vmem:[%s1031_s2] ss:$0 sm:$0xff] }
  0x20   : > { %783 = vmatpush.bf16.msra.mxu2 %v720_v11  ;;  %484 = vmatpush.bf16.msra.mxu0 %v720_v11 }
  0x21   : > { %v332_v12 = vsel %vm208_vm0, %v327_v6, %v331_v7  ;;  %790 = vmatpush.bf16.msra.mxu3 %v725_v17 }
  0x22   : > { %516 = vmatpush.bf16.msra.mxu1 %v725_v17 }
  0x24   : > { %784 = vmatpush.bf16.msra.mxu2 %v719_v18  ;;  %485 = vmatpush.bf16.msra.mxu0 %v719_v18 }
  0x25   : > { %265 = vrot.lane.b32.xlu2 %v888_v8, %s834_s18  ;;  %v289_v8 = vsel %vm208_vm0, %v284_v16, %v900_v20  ;;  %v717_v20 = vld [vmem:[%s1030_s1] sm:$0xff] }
  0x27   : > { %306 = vrot.lane.b32.xlu0 %v281_v60, %s836_s30  ;;  %251 = vrot.lane.b32.xlu1 %v244_v61, %s835_s19 }
  0x28   : > { %785 = vmatpush.bf16.msra.mxu2 %v718_v19  ;;  %486 = vmatpush.bf16.msra.mxu0 %v718_v19 }
  0x2c   : > { %786 = vmatpush.bf16.msra.mxu2 %v717_v20  ;;  %487 = vmatpush.bf16.msra.mxu0 %v717_v20 }
  0x2d   : > { %247 = vrot.lane.b32.xlu2 %v228_v14, %s835_s19 }
  0x2f   : > { %312 = vrot.lane.b32.xlu0 %v305_v10, %s836_s30  ;;  %335 = vrot.lane.b32.xlu1 %v332_v12, %s835_s19 }
  0x37   : > { %261 = vrot.lane.b32.xlu0 %v906_v24, %s834_s18  ;;  %308 = vrot.lane.b32.xlu1 %v289_v8, %s836_s30 }
  0x6c   : > { %v260_v21 = vpop.permute.xlu2 %259 }
  0x77   : > { %v246_v22 = vpop.permute.xlu2 %245 }
  0x78   : > { %v339_v35 = vsel %vm337_vm1, %v909_v25, %v246_v22 }
  0x79   : > { %v348_v37 = vsel %vm346_vm2, %v339_v35, %v260_v21 }
  0x7f   : > { %v266_v23 = vpop.permute.xlu2 %265 }
  0x87   : > { %v248_v28 = vpop.permute.xlu2 %247 }
  0x88   : > { %v341_v30 = vsel %vm337_vm1, %v915_v29, %v248_v28 }
  0x89   : > { %v250_v24 = vpop.permute.xlu0 %249  ;;  %v334_v26 = vpop.permute.xlu1 %333  ;;  %710 = vmatmul.msk.bf16.vlgmr.msra.gmra.mxu1 %vm346_vm2, %v341_v30 }
  0x8a   : > { %v343_v27 = vsel %vm337_vm1, %v874_v0, %v250_v24  ;;  %v369_v29 = vsel %vm337_vm1, %v877_v1, %v334_v26 }
  0x8b   : > { %711 = vmatmul.msk.bf16.vlgmr.msra.gmra.mxu3 %vm346_vm2, %v343_v27 }
  0x91   : > { %v264_v31 = vpop.permute.xlu0 %263  ;;  %v311_v32 = vpop.permute.xlu1 %310 }
  0x92   : > { %v352_v33 = vsel %vm346_vm2, %v343_v27, %v264_v31 }
  0x93   : > { %v363_v34 = vsel %vm355_vm3, %v352_v33, %v311_v32 }
  0x94   : > { %498 = vmatmul.bf16.vlgmr.msra.gmra.mxu2 %v363_v34 }
  0x99   : > { %v307_v0 = vpop.permute.xlu0 %306  ;;  %v252_v36 = vpop.permute.xlu1 %251 }
  0x9a   : > { %v357_v38 = vsel %vm355_vm3, %v348_v37, %v307_v0  ;;  %v345_v39 = vsel %vm337_vm1, %v877_v1, %v252_v36 }
  0x9b   : > { %488 = vmatmul.bf16.vlgmr.msra.gmra.mxu0 %v357_v38  ;;  %712 = vmatmul.msk.bf16.gmra.mxu3 %vm346_vm2, %v369_v29  ;;  %v354_v42 = vsel %vm346_vm2, %v345_v39, %v266_v23 }
  0xa1   : > { %v313_v40 = vpop.permute.xlu0 %312  ;;  %v336_v41 = vpop.permute.xlu1 %335 }
  0xa2   : > { %v366_v25 = vsel %vm355_vm3, %v354_v42, %v313_v40  ;;  %v371_v46 = vsel %vm337_vm1, %v880_v2, %v336_v41 }
  0xa4   : > { %503 = vmatmul.bf16.gmra.mxu2 %v366_v25 }
  0xa9   : > { %v262_v43 = vpop.permute.xlu0 %261  ;;  %v309_v44 = vpop.permute.xlu1 %308 }
  0xaa   : > { %v350_v45 = vsel %vm346_vm2, %v341_v30, %v262_v43 }
  0xab   : > { %713 = vmatmul.msk.bf16.gmra.mxu3 %vm346_vm2, %v371_v46  ;;  %v360_v47 = vsel %vm355_vm3, %v350_v45, %v309_v44 }
  0xac   : > { %493 = vmatmul.bf16.gmra.mxu0 %v360_v47 }
 0x106   : > { %v518_v49 = vpop.f32.mrf.mxu1 }
 0x10e   : > { %v523_v1 = vpop.f32.mrf.mxu3  ;;  %v520_v57 = vpop.f32.mrf.mxu1 }
 0x116   : > { %v525_v48 = vpop.f32.mrf.mxu3 }
 0x117   : > { %v499_v50 = vpop.f32.mrf.mxu2 }
 0x118   : > { %v489_v51 = vpop.f32.mrf.mxu0  ;;  %v500_v59 = vadd.f32 %v825_v52, %v499_v50 }
 0x119   : > { %v490_v53 = vadd.f32 %v825_v52, %v489_v51 }
 0x11b   : > { %v519_v2 = vadd.f32 %v518_v49, %v490_v53 }
 0x11d   : > { %v538_v61 = vmax.f32 %v519_v2, 0.0 }
 0x11e   : > { %v528_v54 = vpop.f32.mrf.mxu3 }
 0x11f   : > { %v501_v55 = vpop.f32.mrf.mxu2  ;;  %v529_v62 = vadd.f32 %v528_v54, %v500_v59 }
 0x120   : > { %v491_v56 = vpop.f32.mrf.mxu0  ;;  %v502_v63 = vadd.f32 %v825_v52, %v501_v55 }
 0x121   : > { %v492_v58 = vadd.f32 %v825_v52, %v491_v56  ;;  %v542_v9 = vmax.f32 %v529_v62, 0.0 }
 0x123   : > { %v521_v60 = vadd.f32 %v520_v57, %v492_v58 }
 0x125   : > { %v539_v3 = vmax.f32 %v521_v60, 0.0 }
 0x126   : > { %v530_v4 = vpop.f32.mrf.mxu3 }
 0x127   : > { %v805_v5 = vpack.i.bf16 %v539_v3, %v538_v61  ;;  %v531_v6 = vadd.f32 %v530_v4, %v502_v63  ;;  %v504_v7 = vpop.f32.mrf.mxu2 }
 0x128   : > { %v505_v18 = vadd.f32 %v825_v52, %v504_v7 }
 0x129   : > { %v543_v10 = vmax.f32 %v531_v6, 0.0  ;;  %806 = vrot.lane.b32.xlu2 %v805_v5, %s836_s30  ;;  %v494_v12 = vpop.f32.mrf.mxu0 }
 0x12a   : > { %v495_v14 = vadd.f32 %v825_v52, %v494_v12 }
 0x12b   : > { %v815_v13 = vpack.i.bf16 %v543_v10, %v542_v9 }
 0x12c   : > { %v524_v15 = vadd.f32 %v523_v1, %v495_v14 }
 0x12d   : > { %816 = vrot.lane.b32.xlu1 %v815_v13, %s836_s30 }
 0x12e   : > { %v533_v16 = vpop.f32.mrf.mxu3  ;;  %v540_v22 = vmax.f32 %v524_v15, 0.0 }
 0x12f   : > { %v506_v11 = vpop.f32.mrf.mxu2  ;;  %v534_v20 = vadd.f32 %v533_v16, %v505_v18 }
 0x130   : > { %v507_v21 = vadd.f32 %v825_v52, %v506_v11 }
 0x131   : > { %v496_v8 = vpop.f32.mrf.mxu0  ;;  %v544_v28 = vmax.f32 %v534_v20, 0.0 }
 0x132   : > { %v497_v17 = vadd.f32 %v825_v52, %v496_v8 }
 0x134   : > { %v526_v19 = vadd.f32 %v525_v48, %v497_v17 }
 0x136   : > { %v541_v23 = vmax.f32 %v526_v19, 0.0  ;;  %v535_v24 = vpop.f32.mrf.mxu3 }
 0x137   : > { %v536_v26 = vadd.f32 %v535_v24, %v507_v21 }
 0x138   : > { %v810_v27 = vpack.i.bf16 %v541_v23, %v540_v22 }
 0x139   : > { %v545_v30 = vmax.f32 %v536_v26, 0.0 }
 0x13a   : > { %811 = vrot.lane.b32.xlu0 %v810_v27, %s836_s30 }
 0x13b   : > { %v820_v31 = vpack.i.bf16 %v545_v30, %v544_v28 }
 0x13d   : > { %821 = vrot.lane.b32.xlu2 %v820_v31, %s836_s30 }
 0x183   : > { %v807_v32 = vpop.permute.xlu2 %806 }
 0x184   : > { %v809_v33 = vunpack.i.h.bf16 %v807_v32  ;;  %v808_v34 = vunpack.i.l.bf16 %v807_v32 }
 0x186   : > { %v579_v35 = vmax.f32 %v539_v3, %v809_v33  ;;  %v578_v0 = vmax.f32 %v538_v61, %v808_v34 }
 0x188   : > { %v586_v36 = vmax.f32 %v578_v0, %v579_v35 }
 0x18a   : > { %v590_v37 = vpack.c.bf16 %v586_v36, %v586_v36 }
 0x18c   : > { %595 = vst.msk [vmem:[%s170_s25] sm:$0xf] %vm594_vm4, %v590_v37 }
 0x197   : > { %v822_v38 = vpop.permute.xlu2 %821 }
 0x198   : > { %v824_v29 = vunpack.i.h.bf16 %v822_v38  ;;  %v823_v39 = vunpack.i.l.bf16 %v822_v38 }
 0x19a   : > { %v585_v40 = vmax.f32 %v545_v30, %v824_v29  ;;  %v584_v41 = vmax.f32 %v544_v28, %v823_v39 }
 0x19c   : > { %v589_v42 = vmax.f32 %v584_v41, %v585_v40 }
 0x19e   : > { %v593_v25 = vpack.c.bf16 %v589_v42, %v589_v42 }
 0x19f   : > { %v817_v43 = vpop.permute.xlu1 %816 }
 0x1a0   : > { %598 = vst.msk [vmem:[%s170_s25 + $0xc] sm:$0xf] %vm594_vm4, %v593_v25  ;;  %v819_v44 = vunpack.i.h.bf16 %v817_v43  ;;  %v818_v45 = vunpack.i.l.bf16 %v817_v43 }
 0x1a2   : > { %v583_v46 = vmax.f32 %v543_v10, %v819_v44  ;;  %v582_v47 = vmax.f32 %v542_v9, %v818_v45 }
 0x1a4   : > { %v588_v1 = vmax.f32 %v582_v47, %v583_v46 }
 0x1a6   : > { %v592_v48 = vpack.c.bf16 %v588_v1, %v588_v1 }
 0x1a8   : > { %597 = vst.msk [vmem:[%s170_s25 + $0x8] sm:$0xf] %vm594_vm4, %v592_v48 }
 0x1ac   : > { %v812_v49 = vpop.permute.xlu0 %811 }
 0x1ad   : > { %v814_v50 = vunpack.i.h.bf16 %v812_v49  ;;  %v813_v51 = vunpack.i.l.bf16 %v812_v49 }
 0x1af   : > { %v581_v52 = vmax.f32 %v541_v23, %v814_v50  ;;  %v580_v53 = vmax.f32 %v540_v22, %v813_v51 }
 0x1b1   : > { %v587_v54 = vmax.f32 %v580_v53, %v581_v52 }
 0x1b3   : > { %v591_v55 = vpack.c.bf16 %v587_v54, %v587_v54 }
 0x1b5   : > { %596 = vst.msk [vmem:[%s170_s25 + $0x4] sm:$0xf] %vm594_vm4, %v591_v55 }
 0x1b6 PF: > { %s13_s12 = sadd.s32 1, %s832_s12  }
 0x1b7   : > { %p10_p4 = scmp.ge.s32.totalorder %s13_s12, 4  }
 0x1b9   :  { %12 = sbr.rel (!%p10_p4) target bundleno = 1 (0x1), region = 62 }

// kernel: cnn_forward.5
= control target key start
LH: loop header
LB: loop body
LE: loop exit
PB: predicated region body
PF: predicated region fallthrough
CT: control target
= control target key end

     0   :  { %s523_s1 = inlined_call_operand.vmem [shape: bf16[256,128], index: 1, kind: input, shape index: {}]   ;;  %s524_s3 = inlined_call_operand.vmem [shape: bf16[128,128], index: 3, kind: input, shape index: {}]   ;;  %s525_s0 = inlined_call_operand.vmem [shape: bf16[8,256], index: 0, kind: input, shape index: {}]   ;;  %s526_s2 = inlined_call_operand.vmem [shape: f32[1,128], index: 2, kind: input, shape index: {}]   ;;  %s527_s4 = inlined_call_operand.vmem [shape: f32[1,128], index: 4, kind: input, shape index: {}]   ;;  %s528_s5 = inlined_call_operand.vmem [shape: f32[8,128], index: 5, kind: output, shape index: {}]  }
   0x1   :  { %v390_v0 = vld [vmem:[%s523_s1 + $0x38] sm:$0xff]  ;;  %v389_v2 = vld [vmem:[%s523_s1 + $0x30] sm:$0xff]  ;;  %v388_v5 = vld [vmem:[%s523_s1 + $0x28] sm:$0xff] }
   0x2   :  { %v398_v1 = vld [vmem:[%s523_s1 + $0x78] sm:$0xff]  ;;  %162 = vmatpush.bf16.msra.mxu0 %v390_v0  ;;  %v397_v3 = vld [vmem:[%s523_s1 + $0x70] sm:$0xff]  ;;  %v396_v6 = vld [vmem:[%s523_s1 + $0x68] sm:$0xff] }
   0x3   :  { %175 = vmatpush.bf16.msra.mxu1 %v398_v1  ;;  %v406_v4 = vld [vmem:[%s524_s3 + $0x38] sm:$0xff]  ;;  %v405_v7 = vld [vmem:[%s524_s3 + $0x30] sm:$0xff]  ;;  %v387_v8 = vld [vmem:[%s523_s1 + $0x20] sm:$0xff] }
   0x4   :  { %269 = vmatpush.bf16.msra.mxu2 %v406_v4  ;;  %v395_v9 = vld [vmem:[%s523_s1 + $0x60] sm:$0xff]  ;;  %v404_v10 = vld [vmem:[%s524_s3 + $0x28] sm:$0xff]  ;;  %v386_v11 = vld [vmem:[%s523_s1 + $0x18] sm:$0xff] }
   0x5   :  { %v394_v12 = vld [vmem:[%s523_s1 + $0x58] sm:$0xff]  ;;  %v403_v13 = vld [vmem:[%s524_s3 + $0x20] sm:$0xff]  ;;  %v385_v14 = vld [vmem:[%s523_s1 + $0x10] sm:$0xff] }
   0x6   :  { %163 = vmatpush.bf16.msra.mxu0 %v389_v2  ;;  %v393_v15 = vld [vmem:[%s523_s1 + $0x50] sm:$0xff]  ;;  %v402_v16 = vld [vmem:[%s524_s3 + $0x18] sm:$0xff]  ;;  %v384_v17 = vld [vmem:[%s523_s1 + $0x8] sm:$0xff] }
   0x7   :  { %176 = vmatpush.bf16.msra.mxu1 %v397_v3  ;;  %v392_v18 = vld [vmem:[%s523_s1 + $0x48] sm:$0xff]  ;;  %v26_v19 = vld [vmem:[%s525_s0] sm:$0xff]  ;;  %v401_v20 = vld [vmem:[%s524_s3 + $0x10] sm:$0xff] }
   0x8   :  { %270 = vmatpush.bf16.msra.mxu2 %v405_v7  ;;  %v60_v21 = vunpack.c.l.b16 %v26_v19  ;;  %v61_v22 = vunpack.c.h.b16 %v26_v19  ;;  %v383_v23 = vld [vmem:[%s523_s1] sm:$0xff]  ;;  %v400_v27 = vld [vmem:[%s524_s3 + $0x8] sm:$0xff] }
   0x9   :  { %v391_v24 = vld [vmem:[%s523_s1 + $0x40] sm:$0xff] }
   0xa   :  { %164 = vmatpush.bf16.msra.mxu0 %v388_v5  ;;  %v62_v25 = vpack.c.b16 %v60_v21, %v60_v21  ;;  %v63_v26 = vpack.c.b16 %v61_v22, %v61_v22  ;;  %v399_v28 = vld [vmem:[%s524_s3] sm:$0xff] }
   0xb   :  { %177 = vmatpush.bf16.msra.mxu1 %v396_v6  ;;  %v407_v29 = vld [vmem:[%s526_s2] ss:$0 sm:$0xff] }
   0xc   :  { %271 = vmatpush.bf16.msra.mxu2 %v404_v10  ;;  %v408_v38 = vld [vmem:[%s527_s4] ss:$0 sm:$0xff] }
   0xe   :  { %165 = vmatpush.bf16.msra.mxu0 %v387_v8 }
   0xf   :  { %178 = vmatpush.bf16.msra.mxu1 %v395_v9 }
  0x10   :  { %272 = vmatpush.bf16.msra.mxu2 %v403_v13 }
  0x12   :  { %166 = vmatpush.bf16.msra.mxu0 %v386_v11 }
  0x13   :  { %179 = vmatpush.bf16.msra.mxu1 %v394_v12 }
  0x14   :  { %273 = vmatpush.bf16.msra.mxu2 %v402_v16 }
  0x16   :  { %167 = vmatpush.bf16.msra.mxu0 %v385_v14 }
  0x17   :  { %180 = vmatpush.bf16.msra.mxu1 %v393_v15 }
  0x18   :  { %274 = vmatpush.bf16.msra.mxu2 %v401_v20 }
  0x1a   :  { %168 = vmatpush.bf16.msra.mxu0 %v384_v17 }
  0x1b   :  { %181 = vmatpush.bf16.msra.mxu1 %v392_v18 }
  0x1c   :  { %275 = vmatpush.bf16.msra.mxu2 %v400_v27 }
  0x1e   :  { %169 = vmatpush.bf16.msra.mxu0 %v383_v23 }
  0x1f   :  { %182 = vmatpush.bf16.msra.mxu1 %v391_v24 }
  0x20   :  { %276 = vmatpush.bf16.msra.mxu2 %v399_v28 }
  0x21   :  { %170 = vmatmul.bf16.vlgmr.msra.gmra.mxu0 %v62_v25 }
  0x22   :  { %183 = vmatmul.bf16.vlgmr.msra.gmra.mxu1 %v63_v26 }
  0x9e   :  { %v171_v30 = vpop.f32.mrf.mxu0 }
  0x9f   :  { %v184_v31 = vpop.f32.mrf.mxu1 }
  0xa0   :  { %v185_v32 = vadd.f32 %v184_v31, %v171_v30 }
  0xa2   :  { %v198_v33 = vadd.f32 %v407_v29, %v185_v32 }
  0xa4   :  { %v199_v34 = vmax.f32 %v198_v33, 0.0 }
  0xa6   :  { %v200_v35 = vpack.c.bf16 %v199_v34, %v199_v34  ;;  %v173_v36 = vpop.f32.mrf.mxu0 }
  0xa7   :  { %v186_v37 = vpop.f32.mrf.mxu1 }
  0xa8   :  { %277 = vmatmul.bf16.vlgmr.msra.gmra.mxu2 %v200_v35 }
 0x12b   :  { %v278_v39 = vpop.f32.mrf.mxu2 }
 0x12c   :  { %v279_v40 = vadd.f32 %v408_v38, %v278_v39 }
 0x12e   :  { %282 = vst [vmem:[%s528_s5] sm:$0xff] %v279_v40 }
 0x133   :  { %v280_v41 = vpop.f32.mrf.mxu2 }

</bundles_post_ra>
